<compile_context>
chip_gen: v7x
topology: tpu7x:2x2x1
jax: 0.10.0
libtpu: 0.0.40
codegen_flags: <defaults>
</compile_context>

<pallas_src>
import functools

import jax
import jax.numpy as jnp
from jax.experimental import pallas as pl
from jax.experimental.pallas import tpu as pltpu


def _mhca_kernel(q_ref, k_ref, v_ref,
                 wq_ref, bq_ref, wk_ref, bk_ref, wv_ref, bv_ref,
                 wo_ref, bo_ref, o_ref, ctx_ref, *, num_heads, approx_recip):
    xq = q_ref[0]                     # (N, C) operand dtype
    xk = k_ref[0]                     # (M, C)
    xv = v_ref[0]                     # (M, C)
    op_dtype = xq.dtype
    n, c = xq.shape
    hd = c // num_heads

    # --- Fused full-width projections (f32 accumulation, bias added once). ---
    # The attention scale is already folded into wq / bq on the host.
    q = jnp.dot(xq, wq_ref[...], preferred_element_type=jnp.float32) + bq_ref[...]
    k = jnp.dot(xk, wk_ref[...], preferred_element_type=jnp.float32) + bk_ref[...]
    v = jnp.dot(xv, wv_ref[...], preferred_element_type=jnp.float32) + bv_ref[...]
    q = q.astype(op_dtype)
    k = k.astype(op_dtype)
    v = v.astype(op_dtype)

    # --- Per-head scaled-dot-product attention. ------------------------------
    # Heads are contiguous lane slices of the projected activations; with
    # head_dim a multiple of 128 every slice / scratch store below is
    # vreg-aligned (no masked partial stores, no relayouts).
    for h in range(num_heads):
        lo = h * hd
        qh = q[:, lo:lo + hd]                                   # (N, hd)
        kh = k[:, lo:lo + hd]                                   # (M, hd)
        vh = v[:, lo:lo + hd]                                   # (M, hd)

        s = jnp.einsum('nd,md->nm', qh, kh,
                       preferred_element_type=jnp.float32)      # (N, M) f32
        s = s - jnp.max(s, axis=-1, keepdims=True)
        p = jnp.exp(s)
        denom = jnp.sum(p, axis=-1, keepdims=True)
        if approx_recip:
            p = p * pl.reciprocal(denom, approx=True)           # EUP slot
        else:
            p = p / denom                                       # exact (f32 path)

        ctx = jnp.dot(p.astype(op_dtype), vh,
                      preferred_element_type=jnp.float32)       # (N, hd) f32
        ctx_ref[:, lo:lo + hd] = ctx.astype(op_dtype)           # concat(heads)

    # --- Output projection on the concatenated heads (one full-width matmul).
    out = jnp.dot(ctx_ref[...], wo_ref[...],
                  preferred_element_type=jnp.float32) + bo_ref[...]
    o_ref[0] = out.astype(o_ref.dtype)


def mhca(query, key, value, wq, bq, wk, bk, wv, bv, wo, bo, *,
         num_heads, operand_dtype=jnp.bfloat16):
    """Multi-head cross attention matching the PyTorch MHCA.forward.

    Weights use the PyTorch nn.Linear layout (w: (C_out, C_in), y = x @ w.T + b).
    `operand_dtype` sets the MXU operand precision (bf16 by default;
    accumulation is always f32).
    """
    B, N, C = query.shape
    Bk, M, Ck = key.shape
    assert value.shape == key.shape and Bk == B and Ck == C
    assert C % num_heads == 0
    head_dim = C // num_heads
    scale = float(head_dim) ** -0.5
    out_dtype = query.dtype

    # Lane-dense (C_in, C_out) weight layout; fold the attention scale into the
    # query projection so the kernel never multiplies activations by it.
    wq_t = jnp.transpose(wq) * scale
    wk_t = jnp.transpose(wk)
    wv_t = jnp.transpose(wv)
    wo_t = jnp.transpose(wo)
    bq_r = (bq * scale).reshape(1, C).astype(jnp.float32)
    bk_r = bk.reshape(1, C).astype(jnp.float32)
    bv_r = bv.reshape(1, C).astype(jnp.float32)
    bo_r = bo.reshape(1, C).astype(jnp.float32)

    compute_dtype = jnp.dtype(operand_dtype)
    query, key, value = (x.astype(compute_dtype) for x in (query, key, value))
    wq_t, wk_t, wv_t, wo_t = (w.astype(compute_dtype)
                              for w in (wq_t, wk_t, wv_t, wo_t))

    kernel = functools.partial(
        _mhca_kernel, num_heads=num_heads,
        approx_recip=(compute_dtype != jnp.dtype(jnp.float32)))

    act_spec = lambda rows: pl.BlockSpec((1, rows, C), lambda b: (b, 0, 0))
    w_spec = pl.BlockSpec((C, C), lambda b: (0, 0))     # resident weights
    b_spec = pl.BlockSpec((1, C), lambda b: (0, 0))     # resident biases

    return pl.pallas_call(
        kernel,
        out_shape=jax.ShapeDtypeStruct((B, N, C), out_dtype),
        grid_spec=pltpu.PrefetchScalarGridSpec(
            num_scalar_prefetch=0,
            grid=(B,),                      # one batch element per grid step
            in_specs=[
                act_spec(N),                # query
                act_spec(M),                # key
                act_spec(M),                # value
                w_spec, b_spec,             # Wq (pre-scaled), bq (pre-scaled)
                w_spec, b_spec,             # Wk, bk
                w_spec, b_spec,             # Wv, bv
                w_spec, b_spec,             # Wo, bo
            ],
            out_specs=pl.BlockSpec((1, N, C), lambda b: (b, 0, 0)),
            scratch_shapes=[pltpu.VMEM((N, C), compute_dtype)],   # concat(heads)
        ),
        compiler_params=pltpu.CompilerParams(
            dimension_semantics=("parallel",),    # batches shard across TCs
            vmem_limit_bytes=48 * 1024 * 1024),   # explicit budget (v7x: 64 MiB)
    )(query, key, value, wq_t, bq_r, wk_t, bk_r, wv_t, bv_r, wo_t, bo_r)


def mhca_ref(query, key, value, wq, bq, wk, bk, wv, bv, wo, bo, num_heads):
    """Pure-JAX reference mirroring the PyTorch module exactly."""
    B, N, C = query.shape
    hd = C // num_heads
    scale = float(hd) ** -0.5
    q = query @ wq.T + bq
    k = key @ wk.T + bk
    v = value @ wv.T + bv
    q = q.reshape(B, N, num_heads, hd).transpose(0, 2, 1, 3) * scale
    k = k.reshape(B, -1, num_heads, hd).transpose(0, 2, 1, 3)
    v = v.reshape(B, -1, num_heads, hd).transpose(0, 2, 1, 3)
    attn = jax.nn.softmax(q @ jnp.swapaxes(k, -1, -2), axis=-1)
    out = jnp.swapaxes(attn @ v, 1, 2).reshape(B, N, C)
    return out @ wo.T + bo


if __name__ == "__main__":
    # dim=256 with num_heads=2 -> head_dim=128 (exactly one lane-width per
    # head, so all per-head slices are vreg-aligned and the output store is
    # lane-dense).  B=2 keeps the grid length >= 2 for both v7x TensorCores.
    B, N, M, C, H = 2, 8, 16, 256, 2

    root = jax.random.PRNGKey(0)
    ks = jax.random.split(root, 11)

    query = jax.random.normal(ks[0], (B, N, C), jnp.float32)
    key_in = jax.random.normal(ks[1], (B, M, C), jnp.float32)
    value_in = jax.random.normal(ks[2], (B, M, C), jnp.float32)

    def linear_params(kw, kb, fan_in, fan_out):
        # PyTorch nn.Linear default init: U(-1/sqrt(fan_in), 1/sqrt(fan_in))
        bound = 1.0 / (fan_in ** 0.5)
        w = jax.random.uniform(kw, (fan_out, fan_in), jnp.float32, -bound, bound)
        b = jax.random.uniform(kb, (fan_out,), jnp.float32, -bound, bound)
        return w, b

    wq, bq = linear_params(ks[3], ks[4], C, C)
    wk, bk = linear_params(ks[5], ks[6], C, C)
    wv, bv = linear_params(ks[7], ks[8], C, C)
    wo, bo = linear_params(ks[9], ks[10], C, C)

    ref = mhca_ref(query, key_in, value_in, wq, bq, wk, bk, wv, bv, wo, bo, H)

    # f32-operand path: tight check against the pure-JAX reference.
    out_f32 = jax.block_until_ready(
        mhca(query, key_in, value_in, wq, bq, wk, bk, wv, bv, wo, bo,
             num_heads=H, operand_dtype=jnp.float32))
    assert out_f32.shape == (B, N, C)
    err_f32 = jnp.max(jnp.abs(out_f32 - ref))
    assert jnp.allclose(out_f32, ref, atol=1e-4, rtol=1e-4), (
        f"f32 path mismatch vs reference, max err {err_f32}")

    # Default bf16-operand path (MXU fast path): looser tolerance.
    out_bf16 = jax.block_until_ready(
        mhca(query, key_in, value_in, wq, bq, wk, bk, wv, bv, wo, bo,
             num_heads=H))
    assert out_bf16.shape == (B, N, C)
    err_bf16 = jnp.max(jnp.abs(out_bf16 - ref))
    assert jnp.allclose(out_bf16, ref, atol=5e-2, rtol=5e-2), (
        f"bf16 path mismatch vs reference, max err {err_bf16}")

    print("KERNEL_OK")
</pallas_src>

<mosaic_0001>
module attributes {stable_mosaic.version = 11 : i64} {
  func.func @_mhca_kernel(%arg0: i32, %arg1: memref<1x8x256xf32, #tpu.memory_space<vmem>>, %arg2: memref<1x16x256xf32, #tpu.memory_space<vmem>>, %arg3: memref<1x16x256xf32, #tpu.memory_space<vmem>>, %arg4: memref<256x256xf32, #tpu.memory_space<vmem>>, %arg5: memref<1x256xf32, #tpu.memory_space<vmem>>, %arg6: memref<256x256xf32, #tpu.memory_space<vmem>>, %arg7: memref<1x256xf32, #tpu.memory_space<vmem>>, %arg8: memref<256x256xf32, #tpu.memory_space<vmem>>, %arg9: memref<1x256xf32, #tpu.memory_space<vmem>>, %arg10: memref<256x256xf32, #tpu.memory_space<vmem>>, %arg11: memref<1x256xf32, #tpu.memory_space<vmem>>, %arg12: memref<1x8x256xf32, #tpu.memory_space<vmem>>, %arg13: memref<8x256xf32, #tpu.memory_space<vmem>>) attributes {dimension_semantics = [#tpu.dimension_semantics<parallel>], iteration_bounds = array<i64: 2>, scalar_prefetch = 0 : i64, scratch_operands = 1 : i64, tpu.core_type = #tpu.core_type<tc>, window_params = [{transform_indices = @transform_0, window_bounds = array<i64: 1, 8, 256>}, {transform_indices = @transform_1, window_bounds = array<i64: 1, 16, 256>}, {transform_indices = @transform_2, window_bounds = array<i64: 1, 16, 256>}, {pipeline_mode = #tpu.pipeline_mode<synchronous>, transform_indices = @transform_3, window_bounds = array<i64: 256, 256>}, {pipeline_mode = #tpu.pipeline_mode<synchronous>, transform_indices = @transform_4, window_bounds = array<i64: 1, 256>}, {pipeline_mode = #tpu.pipeline_mode<synchronous>, transform_indices = @transform_5, window_bounds = array<i64: 256, 256>}, {pipeline_mode = #tpu.pipeline_mode<synchronous>, transform_indices = @transform_6, window_bounds = array<i64: 1, 256>}, {pipeline_mode = #tpu.pipeline_mode<synchronous>, transform_indices = @transform_7, window_bounds = array<i64: 256, 256>}, {pipeline_mode = #tpu.pipeline_mode<synchronous>, transform_indices = @transform_8, window_bounds = array<i64: 1, 256>}, {pipeline_mode = #tpu.pipeline_mode<synchronous>, transform_indices = @transform_9, window_bounds = array<i64: 256, 256>}, {pipeline_mode = #tpu.pipeline_mode<synchronous>, transform_indices = @transform_10, window_bounds = array<i64: 1, 256>}, {transform_indices = @transform_11, window_bounds = array<i64: 1, 8, 256>}]} {
    %c0 = arith.constant 0 : index
    %c0_0 = arith.constant 0 : index
    %c0_1 = arith.constant 0 : index
    %0 = vector.load %arg1[%c0, %c0_0, %c0_1] : memref<1x8x256xf32, #tpu.memory_space<vmem>>, vector<1x8x256xf32>
    %1 = vector.shape_cast %0 : vector<1x8x256xf32> to vector<8x256xf32>
    %c0_2 = arith.constant 0 : index
    %c0_3 = arith.constant 0 : index
    %c0_4 = arith.constant 0 : index
    %2 = vector.load %arg2[%c0_2, %c0_3, %c0_4] : memref<1x16x256xf32, #tpu.memory_space<vmem>>, vector<1x16x256xf32>
    %3 = vector.shape_cast %2 : vector<1x16x256xf32> to vector<16x256xf32>
    %c0_5 = arith.constant 0 : index
    %c0_6 = arith.constant 0 : index
    %c0_7 = arith.constant 0 : index
    %4 = vector.load %arg3[%c0_5, %c0_6, %c0_7] : memref<1x16x256xf32, #tpu.memory_space<vmem>>, vector<1x16x256xf32>
    %5 = vector.shape_cast %4 : vector<1x16x256xf32> to vector<16x256xf32>
    %c0_8 = arith.constant 0 : index
    %c0_9 = arith.constant 0 : index
    %6 = vector.load %arg4[%c0_8, %c0_9] : memref<256x256xf32, #tpu.memory_space<vmem>>, vector<256x256xf32>
    %cst = arith.constant dense<0.000000e+00> : vector<8x256xf32>
    %7 = tpu.matmul %1, %6, %cst {dimension_numbers = #tpu.dot_dimension_numbers<[1], [0], [0], [1], [0, 0, 1, 1], [], []>} : vector<8x256xf32>, vector<256x256xf32>, vector<8x256xf32> -> vector<8x256xf32>
    %c0_10 = arith.constant 0 : index
    %c0_11 = arith.constant 0 : index
    %8 = vector.load %arg5[%c0_10, %c0_11] : memref<1x256xf32, #tpu.memory_space<vmem>>, vector<1x256xf32>
    %9 = vector.broadcast %8 : vector<1x256xf32> to vector<8x256xf32>
    %10 = arith.addf %7, %9 : vector<8x256xf32>
    %c0_12 = arith.constant 0 : index
    %c0_13 = arith.constant 0 : index
    %11 = vector.load %arg6[%c0_12, %c0_13] : memref<256x256xf32, #tpu.memory_space<vmem>>, vector<256x256xf32>
    %cst_14 = arith.constant dense<0.000000e+00> : vector<16x256xf32>
    %12 = tpu.matmul %3, %11, %cst_14 {dimension_numbers = #tpu.dot_dimension_numbers<[1], [0], [0], [1], [0, 0, 1, 1], [], []>} : vector<16x256xf32>, vector<256x256xf32>, vector<16x256xf32> -> vector<16x256xf32>
    %c0_15 = arith.constant 0 : index
    %c0_16 = arith.constant 0 : index
    %13 = vector.load %arg7[%c0_15, %c0_16] : memref<1x256xf32, #tpu.memory_space<vmem>>, vector<1x256xf32>
    %14 = vector.broadcast %13 : vector<1x256xf32> to vector<16x256xf32>
    %15 = arith.addf %12, %14 : vector<16x256xf32>
    %c0_17 = arith.constant 0 : index
    %c0_18 = arith.constant 0 : index
    %16 = vector.load %arg8[%c0_17, %c0_18] : memref<256x256xf32, #tpu.memory_space<vmem>>, vector<256x256xf32>
    %cst_19 = arith.constant dense<0.000000e+00> : vector<16x256xf32>
    %17 = tpu.matmul %5, %16, %cst_19 {dimension_numbers = #tpu.dot_dimension_numbers<[1], [0], [0], [1], [0, 0, 1, 1], [], []>} : vector<16x256xf32>, vector<256x256xf32>, vector<16x256xf32> -> vector<16x256xf32>
    %c0_20 = arith.constant 0 : index
    %c0_21 = arith.constant 0 : index
    %18 = vector.load %arg9[%c0_20, %c0_21] : memref<1x256xf32, #tpu.memory_space<vmem>>, vector<1x256xf32>
    %19 = vector.broadcast %18 : vector<1x256xf32> to vector<16x256xf32>
    %20 = arith.addf %17, %19 : vector<16x256xf32>
    %21 = vector.extract_strided_slice %10 {offsets = [0, 0], sizes = [8, 128], strides = [1, 1]} : vector<8x256xf32> to vector<8x128xf32>
    %22 = vector.extract_strided_slice %15 {offsets = [0, 0], sizes = [16, 128], strides = [1, 1]} : vector<16x256xf32> to vector<16x128xf32>
    %23 = vector.extract_strided_slice %20 {offsets = [0, 0], sizes = [16, 128], strides = [1, 1]} : vector<16x256xf32> to vector<16x128xf32>
    "tpu.trace_start"() <{level = 10 : i32, message = "nd,md->nm"}> : () -> ()
    %cst_22 = arith.constant dense<0.000000e+00> : vector<8x16xf32>
    %24 = tpu.matmul %21, %22, %cst_22 {dimension_numbers = #tpu.dot_dimension_numbers<[1], [1], [0], [0], [0, 0, 1, 0], [], []>} : vector<8x128xf32>, vector<16x128xf32>, vector<8x16xf32> -> vector<8x16xf32>
    "tpu.trace_stop"() : () -> ()
    %cst_23 = arith.constant dense<0xFF800000> : vector<8xf32>
    %25 = vector.multi_reduction <maximumf>, %24, %cst_23 [1] : vector<8x16xf32> to vector<8xf32>
    %26 = vector.shape_cast %25 : vector<8xf32> to vector<8x1xf32>
    %27 = vector.broadcast %26 : vector<8x1xf32> to vector<8x16xf32>
    %28 = arith.subf %24, %27 : vector<8x16xf32>
    %29 = math.exp %28 : vector<8x16xf32>
    %cst_24 = arith.constant dense<0.000000e+00> : vector<8xf32>
    %30 = vector.multi_reduction <add>, %29, %cst_24 [1] : vector<8x16xf32> to vector<8xf32>
    %31 = vector.shape_cast %30 : vector<8xf32> to vector<8x1xf32>
    %32 = vector.broadcast %31 : vector<8x1xf32> to vector<8x16xf32>
    %33 = arith.divf %29, %32 : vector<8x16xf32>
    %cst_25 = arith.constant dense<0.000000e+00> : vector<8x128xf32>
    %34 = tpu.matmul %33, %23, %cst_25 {dimension_numbers = #tpu.dot_dimension_numbers<[1], [0], [0], [1], [0, 0, 1, 1], [], []>} : vector<8x16xf32>, vector<16x128xf32>, vector<8x128xf32> -> vector<8x128xf32>
    %c0_26 = arith.constant 0 : index
    %c0_27 = arith.constant 0 : index
    %35 = vector.load %arg13[%c0_26, %c0_27] : memref<8x256xf32, #tpu.memory_space<vmem>>, vector<8x128xf32>
    tpu.vector_store %arg13[%c0_26, %c0_27], %34 {strides = array<i32>} : memref<8x256xf32, #tpu.memory_space<vmem>>, vector<8x128xf32>,
    %36 = vector.extract_strided_slice %10 {offsets = [0, 128], sizes = [8, 128], strides = [1, 1]} : vector<8x256xf32> to vector<8x128xf32>
    %37 = vector.extract_strided_slice %15 {offsets = [0, 128], sizes = [16, 128], strides = [1, 1]} : vector<16x256xf32> to vector<16x128xf32>
    %38 = vector.extract_strided_slice %20 {offsets = [0, 128], sizes = [16, 128], strides = [1, 1]} : vector<16x256xf32> to vector<16x128xf32>
    "tpu.trace_start"() <{level = 10 : i32, message = "nd,md->nm"}> : () -> ()
    %cst_28 = arith.constant dense<0.000000e+00> : vector<8x16xf32>
    %39 = tpu.matmul %36, %37, %cst_28 {dimension_numbers = #tpu.dot_dimension_numbers<[1], [1], [0], [0], [0, 0, 1, 0], [], []>} : vector<8x128xf32>, vector<16x128xf32>, vector<8x16xf32> -> vector<8x16xf32>
    "tpu.trace_stop"() : () -> ()
    %cst_29 = arith.constant dense<0xFF800000> : vector<8xf32>
    %40 = vector.multi_reduction <maximumf>, %39, %cst_29 [1] : vector<8x16xf32> to vector<8xf32>
    %41 = vector.shape_cast %40 : vector<8xf32> to vector<8x1xf32>
    %42 = vector.broadcast %41 : vector<8x1xf32> to vector<8x16xf32>
    %43 = arith.subf %39, %42 : vector<8x16xf32>
    %44 = math.exp %43 : vector<8x16xf32>
    %cst_30 = arith.constant dense<0.000000e+00> : vector<8xf32>
    %45 = vector.multi_reduction <add>, %44, %cst_30 [1] : vector<8x16xf32> to vector<8xf32>
    %46 = vector.shape_cast %45 : vector<8xf32> to vector<8x1xf32>
    %47 = vector.broadcast %46 : vector<8x1xf32> to vector<8x16xf32>
    %48 = arith.divf %44, %47 : vector<8x16xf32>
    %cst_31 = arith.constant dense<0.000000e+00> : vector<8x128xf32>
    %49 = tpu.matmul %48, %38, %cst_31 {dimension_numbers = #tpu.dot_dimension_numbers<[1], [0], [0], [1], [0, 0, 1, 1], [], []>} : vector<8x16xf32>, vector<16x128xf32>, vector<8x128xf32> -> vector<8x128xf32>
    %c0_32 = arith.constant 0 : index
    %c128 = arith.constant 128 : index
    %50 = vector.load %arg13[%c0_32, %c128] : memref<8x256xf32, #tpu.memory_space<vmem>>, vector<8x128xf32>
    tpu.vector_store %arg13[%c0_32, %c128], %49 {strides = array<i32>} : memref<8x256xf32, #tpu.memory_space<vmem>>, vector<8x128xf32>,
    %c0_33 = arith.constant 0 : index
    %c0_34 = arith.constant 0 : index
    %51 = vector.load %arg13[%c0_33, %c0_34] : memref<8x256xf32, #tpu.memory_space<vmem>>, vector<8x256xf32>
    %c0_35 = arith.constant 0 : index
    %c0_36 = arith.constant 0 : index
    %52 = vector.load %arg10[%c0_35, %c0_36] : memref<256x256xf32, #tpu.memory_space<vmem>>, vector<256x256xf32>
    %cst_37 = arith.constant dense<0.000000e+00> : vector<8x256xf32>
    %53 = tpu.matmul %51, %52, %cst_37 {dimension_numbers = #tpu.dot_dimension_numbers<[1], [0], [0], [1], [0, 0, 1, 1], [], []>} : vector<8x256xf32>, vector<256x256xf32>, vector<8x256xf32> -> vector<8x256xf32>
    %c0_38 = arith.constant 0 : index
    %c0_39 = arith.constant 0 : index
    %54 = vector.load %arg11[%c0_38, %c0_39] : memref<1x256xf32, #tpu.memory_space<vmem>>, vector<1x256xf32>
    %55 = vector.broadcast %54 : vector<1x256xf32> to vector<8x256xf32>
    %56 = arith.addf %53, %55 : vector<8x256xf32>
    %c0_40 = arith.constant 0 : index
    %c0_41 = arith.constant 0 : index
    %c0_42 = arith.constant 0 : index
    %57 = vector.load %arg12[%c0_40, %c0_41, %c0_42] : memref<1x8x256xf32, #tpu.memory_space<vmem>>, vector<1x8x256xf32>
    %58 = vector.shape_cast %57 : vector<1x8x256xf32> to vector<8x256xf32>
    %59 = vector.shape_cast %56 : vector<8x256xf32> to vector<1x8x256xf32>
    tpu.vector_store %arg12[%c0_40, %c0_41, %c0_42], %59 {strides = array<i32>} : memref<1x8x256xf32, #tpu.memory_space<vmem>>, vector<1x8x256xf32>,
    return
  }
  func.func @transform_0(%arg0: i32) -> (i32, i32, i32) {
    %c0_i32 = arith.constant 0 : i32
    %c0_i32_0 = arith.constant 0 : i32
    %c0_i32_1 = arith.constant 0 : i32
    return %arg0, %c0_i32, %c0_i32_0 : i32, i32, i32
  }
  func.func @transform_1(%arg0: i32) -> (i32, i32, i32) {
    %c0_i32 = arith.constant 0 : i32
    %c0_i32_0 = arith.constant 0 : i32
    %c0_i32_1 = arith.constant 0 : i32
    return %arg0, %c0_i32, %c0_i32_0 : i32, i32, i32
  }
  func.func @transform_2(%arg0: i32) -> (i32, i32, i32) {
    %c0_i32 = arith.constant 0 : i32
    %c0_i32_0 = arith.constant 0 : i32
    %c0_i32_1 = arith.constant 0 : i32
    return %arg0, %c0_i32, %c0_i32_0 : i32, i32, i32
  }
  func.func @transform_3(%arg0: i32) -> (i32, i32) {
    %c0_i32 = arith.constant 0 : i32
    %c0_i32_0 = arith.constant 0 : i32
    %c0_i32_1 = arith.constant 0 : i32
    return %c0_i32, %c0_i32_0 : i32, i32
  }
  func.func @transform_4(%arg0: i32) -> (i32, i32) {
    %c0_i32 = arith.constant 0 : i32
    %c0_i32_0 = arith.constant 0 : i32
    %c0_i32_1 = arith.constant 0 : i32
    return %c0_i32, %c0_i32_0 : i32, i32
  }
  func.func @transform_5(%arg0: i32) -> (i32, i32) {
    %c0_i32 = arith.constant 0 : i32
    %c0_i32_0 = arith.constant 0 : i32
    %c0_i32_1 = arith.constant 0 : i32
    return %c0_i32, %c0_i32_0 : i32, i32
  }
  func.func @transform_6(%arg0: i32) -> (i32, i32) {
    %c0_i32 = arith.constant 0 : i32
    %c0_i32_0 = arith.constant 0 : i32
    %c0_i32_1 = arith.constant 0 : i32
    return %c0_i32, %c0_i32_0 : i32, i32
  }
  func.func @transform_7(%arg0: i32) -> (i32, i32) {
    %c0_i32 = arith.constant 0 : i32
    %c0_i32_0 = arith.constant 0 : i32
    %c0_i32_1 = arith.constant 0 : i32
    return %c0_i32, %c0_i32_0 : i32, i32
  }
  func.func @transform_8(%arg0: i32) -> (i32, i32) {
    %c0_i32 = arith.constant 0 : i32
    %c0_i32_0 = arith.constant 0 : i32
    %c0_i32_1 = arith.constant 0 : i32
    return %c0_i32, %c0_i32_0 : i32, i32
  }
  func.func @transform_9(%arg0: i32) -> (i32, i32) {
    %c0_i32 = arith.constant 0 : i32
    %c0_i32_0 = arith.constant 0 : i32
    %c0_i32_1 = arith.constant 0 : i32
    return %c0_i32, %c0_i32_0 : i32, i32
  }
  func.func @transform_10(%arg0: i32) -> (i32, i32) {
    %c0_i32 = arith.constant 0 : i32
    %c0_i32_0 = arith.constant 0 : i32
    %c0_i32_1 = arith.constant 0 : i32
    return %c0_i32, %c0_i32_0 : i32, i32
  }
  func.func @transform_11(%arg0: i32) -> (i32, i32, i32) {
    %c0_i32 = arith.constant 0 : i32
    %c0_i32_0 = arith.constant 0 : i32
    %c0_i32_1 = arith.constant 0 : i32
    return %arg0, %c0_i32, %c0_i32_0 : i32, i32, i32
  }
}

</mosaic_0001>

<bundles_post_ra>
// kernel: tpu_custom_call.1
= control target key start
LH: loop header
LB: loop body
LE: loop exit
PB: predicated region body
PF: predicated region fallthrough
CT: control target
= control target key end

     0   :  { %s2852_s0 = inlined_call_operand.hbm [shape: f32[2,8,256], index: 0, kind: input, shape index: {}]   ;;  %s2853_s1 = inlined_call_operand.hbm [shape: f32[2,16,256], index: 1, kind: input, shape index: {}]   ;;  %s2854_s2 = inlined_call_operand.hbm [shape: f32[2,16,256], index: 2, kind: input, shape index: {}]   ;;  %s2855_s3 = inlined_call_operand.hbm [shape: f32[256,256], index: 3, kind: input, shape index: {}]   ;;  %s2856_s4 = inlined_call_operand.vmem [shape: f32[1,256], index: 4, kind: input, shape index: {}]   ;;  %s2857_s5 = inlined_call_operand.hbm [shape: f32[256,256], index: 5, kind: input, shape index: {}]   ;;  %s2858_s6 = inlined_call_operand.vmem [shape: f32[1,256], index: 6, kind: input, shape index: {}]   ;;  %s2859_s7 = inlined_call_operand.hbm [shape: f32[256,256], index: 7, kind: input, shape index: {}]   ;;  %s2860_s8 = inlined_call_operand.vmem [shape: f32[1,256], index: 8, kind: input, shape index: {}]   ;;  %s2861_s9 = inlined_call_operand.hbm [shape: f32[256,256], index: 9, kind: input, shape index: {}]   ;;  %s2862_s10 = inlined_call_operand.vmem [shape: f32[1,256], index: 10, kind: input, shape index: {}]   ;;  %s2863_s11 = inlined_call_operand.hbm [shape: f32[2,8,256], index: 11, kind: output, shape index: {}]  }
   0x1   :  { %2889 = sst [smem:[#allocation27_spill]] %s2853_s1 }
   0x2   :  { %2890 = sst [smem:[#allocation28_spill]] %s2855_s3 }
   0x3   :  { %2891 = sst [smem:[#allocation29_spill]] %s2856_s4 }
   0x4   :  { %2892 = sst [smem:[#allocation30_spill]] %s2858_s6 }
   0x5   :  { %2893 = sst [smem:[#allocation31_spill]] %s2859_s7 }
   0x6   :  { %2894 = sst [smem:[#allocation32_spill]] %s2860_s8 }
   0x7   :  { %2895 = sst [smem:[#allocation33_spill]] %s2862_s10 }
   0x8   :  { %2896 = sst [smem:[#allocation34_spill]] %s2863_s11 }
   0x9   :  { %16 = vsyncpa [#allocation4], 0 }
   0xa   :  { %18 = vsyncpa [#allocation4 + $0x1], 0 }
   0xb   :  { %19 = vsyncpa [#allocation7], 0 }
   0xc   :  { %21 = vsyncpa [#allocation7 + $0x1], 0 }
   0xd   :  { %22 = vsyncpa [#allocation10], 0 }
   0xe   :  { %23 = vsyncpa [#allocation13], 0 }
   0xf   :  { %24 = vsyncpa [#allocation5], 0 }
  0x10   :  { %26 = vsyncpa [#allocation5 + $0x1], 0  ;;  %s2438_s17 = smov 0   ;;  %s2440_s18 = smov 0  }
  0x11   :  { %s2442_s19 = smov 0   ;;  %s2444_s20 = smov 0  }
  0x12 LB: > { %2897 = sst [smem:[#allocation21_spill]] %s2351_s17  ;;  %s2459_s21 = sadd.s32 4294967295, %s2363_s20   ;;  %s2363_s20 = sphi %s2444_s20, %s2939_s20   ;;  %s2359_s19 = sphi %s2442_s19, %s2941_s19   ;;  %s2355_s18 = sphi %s2440_s18, %s2943_s18   ;;  %s2351_s17 = sphi %s2438_s17, %s2942_s17  }
  0x13   : > { %2898 = sst [smem:[#allocation22_spill]] %s2359_s19  ;;  %s1629_s22 = sadd.s32 4294967294, %s2363_s20  }
  0x14   : > { %p52_p0 = scmp.ne.s32.totalorder %s2355_s18, %s2351_s17  ;;  %p2864_p1 = scmp.eq.s32.totalorder %s2459_s21, 0 }
  0x15   : > { %p302_p3 = scmp.eq.s32.totalorder %s1629_s22, 1  ;;  %p1630_p5 = scmp.ge.s32.totalorder %s2363_s20, 1 }
  0x16   : > { %p2468_p4 = por %p2864_p1, %p52_p0  ;;  %p309_p7 = scmp.lt.s32.totalorder %s2363_s20, 3 }
  0x17   : > { %p2473_p6 = por %p302_p3, %p52_p0  ;;  %s2365_s26 = smov [#allocation9]  }
  0x18   : > { %s2899_s23 = scalar_select %p2468_p4, 1, 0 }
  0x19   : > { %s2900_s24 = scalar_select %p2473_p6, 1, 0 }
  0x1a   : > { %p2478_p8 = pnand %p1630_p5, %p309_p7  ;;  %s321_s27 = sshll.u32 %s2365_s26, 4  ;;  %s2482_s27 = int_to_ptr.vmem [resolvable:$true] %s321_s27 }
  0x1b   : > { %2901 = sst [smem:[#allocation23_spill]] %s2900_s24  ;;  %s2366_s29 = smov [#allocation12]  }
  0x1c   : > { %s2902_s25 = scalar_select %p2478_p8, 1, 0 }
  0x1d   : > { %p1997_p9 = pneg %p2478_p8  ;;  %s353_s30 = sshll.u32 %s2366_s29, 4  ;;  %s2493_s30 = int_to_ptr.vmem [resolvable:$true] %s353_s30 }
  0x1e   : > { %s2904_s3 = sld [smem:[#allocation28_spill]] }
  0x1f   : > { %p2489_p11 = pnand %p1997_p9, %p2864_p1 }
  0x21   : > { %s2903_s28 = scalar_select %p2489_p11, 1, 0 }
  0x22   : > { %p2503_p13 = pneg %p2489_p11 }
  0x24   : > { %s2083_s14 = scalar_lea.hbm %s2904_s3, 8192 }
  0x25   : > { %p2084_p12 = scmp.ne.s32.totalorder %s2904_s3, %s2083_s14  ;;  %p2090_p5 = scmp.lt.u32.totalorder %s2083_s14, %s2904_s3 }
  0x26   : > { %s2905_s22 = scalar_select %p2503_p13, 1, 0 }
  0x27   : > { %p2086_p0 = pnand %p2503_p13, %p2084_p12 }
  0x29   : > { %p2087_p3 = pneg %p2086_p0 }
  0x2b   : > { %p2092_p7 = pnand %p2090_p5, %p2087_p3 }
  0x2d   : > { %2095 = shalt.err (!%p2092_p7)
}
  0x2e   : > { %s2096_s12 = scalar_lea.vmem %s2482_s27, 8192  ;;  %p2104_p2 = scmp.lt.s32.totalorder %s2482_s27, %s2482_s27 }
  0x2f   : > { %p2097_p9 = scmp.ne.s32.totalorder %s2482_s27, %s2096_s12  ;;  %p2105_p6 = scmp.lt.s32.totalorder %s2096_s12, %s2096_s12 }
  0x31   : > { %p2099_p10 = pnand %p2097_p9, %p2503_p13  ;;  %p2106_p12 = por %p2105_p6, %p2104_p2 }
  0x33   : > { %p2100_p1 = pneg %p2099_p10 }
  0x35   : > { %p2107_p0 = pnand %p2106_p12, %p2100_p1 }
  0x37   : > { %2110 = shalt.err (!%p2107_p0)
}
  0x38   : > { %s2868_s13 = smov 256   ;;  %s2870_s14 = smov 16  }
  0x39   : > { %2000 = dma.hbm_to_vmem [thread:$0]  (!%p2489_p11), %s2904_s3, 8192, %s2482_s27, [#allocation10], %s2868_s13, %s2868_s13, %s2870_s14  }
  0x3a   : > { %s2906_s7 = sld [smem:[#allocation31_spill]] }
  0x40   : > { %s2111_s12 = scalar_lea.hbm %s2906_s7, 8192 }
  0x41   : > { %p2112_p1 = scmp.ne.s32.totalorder %s2906_s7, %s2111_s12  ;;  %p2118_p10 = scmp.lt.u32.totalorder %s2111_s12, %s2906_s7 }
  0x43   : > { %p2114_p2 = pnand %p2112_p1, %p2503_p13 }
  0x45   : > { %p2115_p6 = pneg %p2114_p2 }
  0x47   : > { %p2120_p3 = pnand %p2118_p10, %p2115_p6 }
  0x49   : > { %2123 = shalt.err (!%p2120_p3)
}
  0x4a   : > { %s2124_s27 = scalar_lea.vmem %s2493_s30, 8192  ;;  %p2132_p12 = scmp.lt.s32.totalorder %s2493_s30, %s2493_s30 }
  0x4b   : > { %p2125_p5 = scmp.ne.s32.totalorder %s2493_s30, %s2124_s27  ;;  %p2133_p0 = scmp.lt.s32.totalorder %s2124_s27, %s2124_s27 }
  0x4d   : > { %p2127_p7 = pnand %p2125_p5, %p2503_p13  ;;  %p2134_p1 = por %p2133_p0, %p2132_p12 }
  0x4f   : > { %p2128_p9 = pneg %p2127_p7 }
  0x51   : > { %p2135_p2 = pnand %p2134_p1, %p2128_p9 }
  0x53   : > { %2138 = shalt.err (!%p2135_p2)
}
  0x54   : > { %2006 = dma.hbm_to_vmem [thread:$0]  (!%p2489_p11), %s2906_s7, 8192, %s2493_s30, [#allocation13], %s2868_s13, %s2868_s13, %s2870_s14  }
  0x55   : > { %s2554_s17 = sadd.s32 1, %s2363_s20   ;;  %s39_s24 = sadd.s32 1, %s2359_s19 }
  0x56   : > { %2907 = sst [smem:[#allocation24_spill]] %s2554_s17  ;;  %s36_s15 = ssub.s32 %s2363_s20, %s2554_s17 }
  0x57   : > { %p46_p6 = scmp.ne.s32.totalorder %s2359_s19, %s2355_s18  ;;  %p37_p10 = scmp.eq.s32.totalorder %s36_s15, 0 }
  0x58   : > { %p47_p3 = scmp.eq.s32.totalorder %s2363_s20, 0  ;;  %p2908_p5 = scmp.eq.s32.totalorder %s2459_s21, 1 }
  0x59   : > { %p2028_p9 = scmp.lt.s32.totalorder %s2363_s20, 2  ;;  %s2573_s29 = sand.u32 1, %s2359_s19  }
  0x5a   : > { %p2564_p7 = por %p2908_p5, %p46_p6  ;;  %p48_p12 = por %p47_p3, %p46_p6 }
  0x5b   : > { %s2570_s26 = scalar_select %p37_p10, %s2359_s19, %s39_s24  }
  0x5c   : > { %s2909_s16 = scalar_select %p2564_p7, 1, 0 }
  0x5d   : > { %2911 = sst [smem:[#allocation26_spill]] %s2570_s26  ;;  %s405_s30 = sand.u32 1, %s2363_s20  }
  0x5e   : > { %2910 = sst [smem:[#allocation25_spill]] %s2909_s16  ;;  %s2875_s12 = sshll.u32 %s2573_s29, 5 }
  0x5f   : > { %p2577_p0 = pnand %p2028_p9, %p48_p12  ;;  %s1662_s10 = sshll.u32 %s2363_s20, 9 }
  0x60   : > { %s2913_s1 = sld [smem:[#allocation27_spill]]  ;;  %s409_s24 = scalar_lea.vmem [#allocation6], %s2875_s12 }
  0x61   : > { %s2912_s27 = scalar_select %p2577_p0, 1, 0 }
  0x62   : > { %s416_s14 = sshll.u32 %s409_s24, 4  ;;  %s2594_s26 = scalar_lea.hbm %s2854_s2, %s1662_s10  ;;  %s2589_s14 = int_to_ptr.vmem [resolvable:$true] %s416_s14 }
  0x63   : > { %s2596_s19 = scalar_lea.sflag [#allocation7], %s405_s30  ;;  %p2602_p2 = pneg %p2577_p0 }
  0x65   : > { %s2914_s11 = scalar_select %p2602_p2, 1, 0 }
  0x66   : > { %s2585_s13 = scalar_lea.hbm %s2913_s1, %s1662_s10  ;;  %s2144_s12 = scalar_lea.hbm %s2913_s1, 1024 }
  0x67   : > { %s2139_s17 = scalar_lea.hbm %s2585_s13, 512  ;;  %p2145_p3 = scmp.lt.u32.totalorder %s2585_s13, %s2913_s1 }
  0x68   : > { %p2140_p1 = scmp.ne.s32.totalorder %s2585_s13, %s2139_s17  ;;  %p2146_p5 = scmp.lt.u32.totalorder %s2144_s12, %s2139_s17 }
  0x69   : > { %p2148_p12 = scmp.lt.u32.totalorder %s2139_s17, %s2585_s13 }
  0x6a   : > { %p2142_p6 = pnand %p2602_p2, %p2140_p1  ;;  %p2147_p9 = por %p2146_p5, %p2145_p3 }
  0x6c   : > { %p2143_p10 = pneg %p2142_p6  ;;  %p2149_p7 = por %p2148_p12, %p2147_p9 }
  0x6e   : > { %p2150_p4 = pnand %p2149_p7, %p2143_p10 }
  0x70   : > { %2153 = shalt.err (!%p2150_p4)
}
  0x71   : > { %s2154_s30 = scalar_lea.vmem %s2589_s14, 512  ;;  %s2369_s10 = smov [#allocation6]  }
  0x72   : > { %p2155_p1 = scmp.ne.s32.totalorder %s2589_s14, %s2154_s30  ;;  %s2159_s15 = sshll.u32 %s2369_s10, 4  ;;  %s2160_s15 = int_to_ptr.vmem [resolvable:$false] %s2159_s15 }
  0x73   : > { %s2161_s24 = scalar_lea.vmem %s2160_s15, 1024  ;;  %p2162_p11 = scmp.lt.s32.totalorder %s2589_s14, %s2160_s15 }
  0x74   : > { %p2157_p6 = pnand %p2155_p1, %p2602_p2  ;;  %p2163_p13 = scmp.lt.s32.totalorder %s2161_s24, %s2154_s30 }
  0x76   : > { %p2158_p8 = pneg %p2157_p6  ;;  %p2164_p3 = por %p2163_p13, %p2162_p11 }
  0x78   : > { %p2165_p5 = pnand %p2164_p3, %p2158_p8 }
  0x7a   : > { %2168 = shalt.err (!%p2165_p5)
}
  0x7b   : > { %s2915_s17 = smov 16   ;;  %s2916_s12 = smov 256  }
  0x7c   : > { %2016 = dma.hbm_to_vmem [thread:$0]  (!%p2577_p0), %s2585_s13, 512, %s2589_s14, %s2596_s19, %s2916_s12, %s2916_s12, %s2915_s17  }
  0x7d   : > { %s2917_s3 = sshll.u32 %s2573_s29, 5  ;;  %s2370_s30 = smov [#allocation11]  }
  0x7e   : > { %s430_s7 = scalar_lea.vmem [#allocation8], %s2917_s3  ;;  %s337_s15 = sshll.u32 %s2370_s30, 4  ;;  %s338_s15 = int_to_ptr.vmem [resolvable:$true] %s337_s15 }
  0x7f   : > { %s437_s10 = sshll.u32 %s430_s7, 4  ;;  %s2169_s16 = scalar_lea.hbm %s2857_s5, 8192  ;;  %s2631_s10 = int_to_ptr.vmem [resolvable:$true] %s437_s10 }
  0x80   : > { %p2170_p4 = scmp.ne.s32.totalorder %s2857_s5, %s2169_s16  ;;  %p2918_p8 = scmp.ne.s32.totalorder %s2905_s22, 0 }
  0x81   : > { %p2176_p7 = scmp.lt.u32.totalorder %s2169_s16, %s2857_s5 }
  0x82   : > { %p2172_p11 = pnand %p2170_p4, %p2918_p8 }
  0x84   : > { %p2173_p13 = pneg %p2172_p11 }
  0x86   : > { %p2178_p10 = pnand %p2176_p7, %p2173_p13 }
  0x88   : > { %2181 = shalt.err (!%p2178_p10)
}
  0x89   : > { %s2182_s3 = scalar_lea.vmem %s338_s15, 8192  ;;  %p2190_p6 = scmp.lt.s32.totalorder %s338_s15, %s338_s15 }
  0x8a   : > { %p2183_p9 = scmp.ne.s32.totalorder %s338_s15, %s2182_s3  ;;  %p2191_p3 = scmp.lt.s32.totalorder %s2182_s3, %s2182_s3 }
  0x8c   : > { %p2185_p12 = pnand %p2183_p9, %p2918_p8  ;;  %p2192_p5 = por %p2191_p3, %p2190_p6 }
  0x8e   : > { %p2186_p1 = pneg %p2185_p12 }
  0x90   : > { %p2193_p0 = pnand %p2192_p5, %p2186_p1 }
  0x92   : > { %2196 = shalt.err (!%p2193_p0)
}
  0x93   : > { %p2919_p4 = scmp.ne.s32.totalorder %s2903_s28, 0  ;;  %s2371_s8 = smov [#allocation14]  }
  0x94   : > { %s369_s16 = sshll.u32 %s2371_s8, 4  ;;  %s1636_s7 = sshll.u32 %s2573_s29, 4  ;;  %s370_s16 = int_to_ptr.vmem [resolvable:$true] %s369_s16 }
  0x95   : > { %2003 = dma.hbm_to_vmem [thread:$0]  (!%p2919_p4), %s2857_s5, 8192, %s338_s15, [#allocation10], %s2916_s12, %s2916_s12, %s2915_s17  }
  0x96   : > { %s2197_s13 = scalar_lea.hbm %s2861_s9, 8192 }
  0x97   : > { %p2198_p0 = scmp.ne.s32.totalorder %s2861_s9, %s2197_s13  ;;  %p2204_p7 = scmp.lt.u32.totalorder %s2197_s13, %s2861_s9 }
  0x99   : > { %p2200_p11 = pnand %p2198_p0, %p2918_p8 }
  0x9b   : > { %p2201_p13 = pneg %p2200_p11 }
  0x9d   : > { %p2206_p10 = pnand %p2204_p7, %p2201_p13 }
  0x9f   : > { %2209 = shalt.err (!%p2206_p10)
}
  0xa0   : > { %s2210_s15 = scalar_lea.vmem %s370_s16, 8192  ;;  %p2218_p6 = scmp.lt.s32.totalorder %s370_s16, %s370_s16 }
  0xa1   : > { %p2211_p9 = scmp.ne.s32.totalorder %s370_s16, %s2210_s15  ;;  %p2219_p3 = scmp.lt.s32.totalorder %s2210_s15, %s2210_s15 }
  0xa3   : > { %p2213_p12 = pnand %p2211_p9, %p2918_p8  ;;  %p2220_p5 = por %p2219_p3, %p2218_p6 }
  0xa5   : > { %p2214_p1 = pneg %p2213_p12 }
  0xa7   : > { %p2221_p2 = pnand %p2220_p5, %p2214_p1 }
  0xa9   : > { %2224 = shalt.err (!%p2221_p2)
}
  0xaa   : > { %2009 = dma.hbm_to_vmem [thread:$0]  (!%p2919_p4), %s2861_s9, 8192, %s370_s16, [#allocation13], %s2916_s12, %s2916_s12, %s2915_s17  }
  0xab   : > { %s1661_s22 = sshll.u32 %s2363_s20, 8  ;;  %s390_s28 = scalar_lea.vmem [#allocation3], %s1636_s7 }
  0xac   : > { %s2680_s24 = scalar_lea.hbm %s2852_s0, %s1661_s22  ;;  %s398_s13 = sshll.u32 %s390_s28, 4  ;;  %s399_s13 = int_to_ptr.vmem [resolvable:$true] %s398_s13 }
  0xad   : > { %s387_s14 = scalar_lea.sflag [#allocation4], %s2573_s29  ;;  %s2225_s3 = scalar_lea.hbm %s2680_s24, 256 }
  0xae   : > { %p2226_p2 = scmp.ne.s32.totalorder %s2680_s24, %s2225_s3  ;;  %p2920_p8 = scmp.ne.s32.totalorder %s2914_s11, 0 }
  0xaf   : > { %s2230_s15 = scalar_lea.hbm %s2852_s0, 512  ;;  %p2231_p4 = scmp.lt.u32.totalorder %s2680_s24, %s2852_s0 }
  0xb0   : > { %p2228_p0 = pnand %p2226_p2, %p2920_p8  ;;  %p2232_p13 = scmp.lt.u32.totalorder %s2230_s15, %s2225_s3 }
  0xb1   : > { %p2234_p10 = scmp.lt.u32.totalorder %s2225_s3, %s2680_s24 }
  0xb2   : > { %p2229_p11 = pneg %p2228_p0  ;;  %p2233_p7 = por %p2232_p13, %p2231_p4 }
  0xb4   : > { %p2235_p9 = por %p2234_p10, %p2233_p7 }
  0xb6   : > { %p2236_p12 = pnand %p2235_p9, %p2229_p11 }
  0xb8   : > { %2239 = shalt.err (!%p2236_p12)
}
  0xb9   : > { %s2240_s29 = scalar_lea.vmem %s399_s13, 256  ;;  %s2372_s7 = smov [#allocation3]  }
  0xba   : > { %p2241_p1 = scmp.ne.s32.totalorder %s399_s13, %s2240_s29  ;;  %s2245_s22 = sshll.u32 %s2372_s7, 4  ;;  %s2246_s22 = int_to_ptr.vmem [resolvable:$false] %s2245_s22 }
  0xbb   : > { %s2247_s8 = scalar_lea.vmem %s2246_s22, 512  ;;  %p2248_p5 = scmp.lt.s32.totalorder %s399_s13, %s2246_s22 }
  0xbc   : > { %p2243_p6 = pnand %p2241_p1, %p2920_p8  ;;  %p2249_p2 = scmp.lt.s32.totalorder %s2247_s8, %s2240_s29 }
  0xbe   : > { %p2244_p3 = pneg %p2243_p6  ;;  %p2250_p0 = por %p2249_p2, %p2248_p5 }
  0xc0   : > { %p2251_p4 = pnand %p2250_p0, %p2244_p3 }
  0xc2   : > { %2254 = shalt.err (!%p2251_p4)
}
  0xc3   : > { %p2921_p13 = scmp.ne.s32.totalorder %s2912_s27, 0  ;;  %s2255_s30 = scalar_lea.hbm %s2594_s26, 512 }
  0xc4   : > { %p2256_p11 = scmp.ne.s32.totalorder %s2594_s26, %s2255_s30  ;;  %s2260_s16 = scalar_lea.hbm %s2854_s2, 1024 }
  0xc5   : > { %2013 = dma.hbm_to_vmem [thread:$0]  (!%p2921_p13), %s2680_s24, 256, %s399_s13, %s387_s14  }
  0xc6   : > { %p2258_p7 = pnand %p2256_p11, %p2920_p8  ;;  %p2261_p9 = scmp.lt.u32.totalorder %s2594_s26, %s2854_s2 }
  0xc7   : > { %p2262_p12 = scmp.lt.u32.totalorder %s2260_s16, %s2255_s30  ;;  %p2264_p6 = scmp.lt.u32.totalorder %s2255_s30, %s2594_s26 }
  0xc8   : > { %p2259_p10 = pneg %p2258_p7 }
  0xc9   : > { %p2263_p1 = por %p2262_p12, %p2261_p9 }
  0xcb   : > { %p2265_p3 = por %p2264_p6, %p2263_p1 }
  0xcd   : > { %p2266_p5 = pnand %p2265_p3, %p2259_p10 }
  0xcf   : > { %2269 = shalt.err (!%p2266_p5)
}
  0xd0   : > { %s2270_s24 = scalar_lea.vmem %s2631_s10, 512  ;;  %s2373_s13 = smov [#allocation8]  }
  0xd1   : > { %p2271_p2 = scmp.ne.s32.totalorder %s2631_s10, %s2270_s24  ;;  %s2275_s14 = sshll.u32 %s2373_s13, 4  ;;  %s2276_s14 = int_to_ptr.vmem [resolvable:$false] %s2275_s14 }
  0xd2   : > { %s2277_s6 = scalar_lea.vmem %s2276_s14, 1024  ;;  %p2278_p11 = scmp.lt.s32.totalorder %s2631_s10, %s2276_s14 }
  0xd3   : > { %p2273_p0 = pnand %p2271_p2, %p2920_p8  ;;  %p2279_p7 = scmp.lt.s32.totalorder %s2277_s6, %s2270_s24 }
  0xd5   : > { %p2274_p4 = pneg %p2273_p0  ;;  %p2280_p9 = por %p2279_p7, %p2278_p11 }
  0xd7   : > { %p2281_p12 = pnand %p2280_p9, %p2274_p4 }
  0xd9   : > { %2284 = shalt.err (!%p2281_p12)
}
  0xda   : > { %2019 = dma.hbm_to_vmem [thread:$0]  (!%p2921_p13), %s2594_s26, 512, %s2631_s10, %s2596_s19, %s2916_s12, %s2916_s12, %s2915_s17  }
  0xdb   : > { %p2922_p8 = scmp.ne.s32.totalorder %s2902_s25, 0 }
  0xdc   : > { %s2728_s11 = sand.u32 (!%p2922_p8), 1, %s2355_s18   ;;  %p2923_p10 = scmp.ne.s32.totalorder (!%p2922_p8), %s2899_s23, 0 }
  0xdd   : > { %449 = sbr.rel (%p2922_p8) target bundleno = 1505 (0x5e1), region = 64  ;;  %s1646_s4 = sshll.u32 (!%p2922_p8), %s2728_s11, 4 }
  0xde   : > { %s452_s29 = scalar_lea.sflag (!%p2922_p8), [#allocation4], %s2728_s11  ;;  %s2734_s27 = scalar_lea.vmem (!%p2922_p8), [#allocation3], %s1646_s4 }
  0xe4   : > { %2330 = dma.done.wait (%p2923_p10), %s452_s29, 256  }
  0xe5   : > { %2332 = vsyncadd (%p2923_p10), %s452_s29, 4294967040  ;;  %s460_s19 = sand.u32 1, %s2459_s21   ;;  %s1647_s25 = sshll.u32 %s2728_s11, 5 }
  0xe6   : > { %s461_s26 = scalar_lea.sflag [#allocation7], %s460_s19  ;;  %s2742_s17 = scalar_lea.vmem [#allocation6], %s1647_s25 }
  0xe7   : > { %2334 = dma.done.wait (%p2923_p10), %s461_s26, 1024  }
  0xe8   : > { %2336 = vsyncadd (%p2923_p10), %s461_s26, 4294966272  ;;  %s2748_s12 = scalar_lea.vmem [#allocation8], %s1647_s25  ;;  %p2924_p13 = scmp.eq.s32.totalorder %s2459_s21, 0 }
  0xea   : > { %2338 = dma.done.wait (%p2924_p13), [#allocation10], 16384   ;;  %p2925_p1 = pmov %p2924_p13 }
  0xec   : > { %2340 = vsyncadd (%p2925_p1), [#allocation10], 4294950912  ;;  %p2926_p6 = pmov %p2925_p1 }
  0xed   : > { %p2927_p3 = pmov %p2925_p1 }
  0xee   : > { %2342 = dma.done.wait (%p2926_p6), [#allocation13], 16384  }
  0xef   : > { %2344 = vsyncadd (%p2927_p3), [#allocation13], 4294950912  ;;  %v696_v0 = vld [vmem:[#allocation11 + $0x8] sm:$0xff]  ;;  %v698_v1 = vld [vmem:[#allocation11 + $0x18] sm:$0xff]  ;;  %vm2375_vm0 = vmmov 0   ;;  %s2928_s7 = sld [smem:[#allocation30_spill]] }
  0xf0   : > { %v695_v2 = vld [vmem:[#allocation11] sm:$0xff]  ;;  %v1769_v3 = vpack.c.bf16 %v698_v1, %v696_v0  ;;  %v697_v4 = vld [vmem:[#allocation11 + $0x10] sm:$0xff]  ;;  %v700_v5 = vld [vmem:[#allocation11 + $0x28] sm:$0xff]  ;;  %s2929_s30 = sld [smem:[#allocation29_spill]]  ;;  %s2930_s16 = sld [smem:[#allocation32_spill]]  ;;  %vm1071_vm1 = vcmask 130048  }
  0xf1   : > { %v702_v6 = vld [vmem:[#allocation11 + $0x38] sm:$0xff]  ;;  %v1771_v7 = vpack.c.bf16 %v697_v4, %v695_v2  ;;  %v699_v9 = vld [vmem:[#allocation11 + $0x20] sm:$0xff]  ;;  %v701_v10 = vld [vmem:[#allocation11 + $0x30] sm:$0xff]  ;;  %s2931_s24 = sld [smem:[#allocation33_spill]]  ;;  %s2932_s13 = sld [smem:[#allocation25_spill]] }
  0xf2   : > { %v1773_v8 = vpack.c.bf16 %v702_v6, %v700_v5  ;;  %v704_v11 = vld [vmem:[#allocation11 + $0x48] sm:$0xff]  ;;  %1770 = vmatprep.subr.bf16.mxu1 %v1769_v3  ;;  %v706_v12 = vld [vmem:[#allocation11 + $0x58] sm:$0xff]  ;;  %v1775_v13 = vpack.c.bf16 %v701_v10, %v699_v9  ;;  %v703_v14 = vld [vmem:[#allocation11 + $0x40] sm:$0xff]  ;;  %s1664_s14 = sshll.u32 %s2459_s21, 8  ;;  %s537_s6 = scalar_lea.vmem [#allocation15], %s1646_s4 }
  0xf3   : > { %1772 = vmatpush1.bf16.msra.mxu1 %v1771_v7  ;;  %v549_v15 = vld [vmem:[#allocation9 + $0x8] sm:$0xff]  ;;  %v1777_v16 = vpack.c.bf16 %v706_v12, %v704_v11  ;;  %v705_v17 = vld [vmem:[#allocation11 + $0x50] sm:$0xff]  ;;  %v551_v19 = vld [vmem:[#allocation9 + $0x18] sm:$0xff]  ;;  %s1478_s29 = sshll.u32 %s537_s6, 4  ;;  %s2933_s25 = sld [smem:[#allocation34_spill]]  ;;  %s2810_s29 = int_to_ptr.vmem [resolvable:$true] %s1478_s29 }
  0xf4   : > { %1774 = vmatprep.subr.bf16.mxu1 %v1773_v8  ;;  %v708_v18 = vld [vmem:[#allocation11 + $0x68] sm:$0xff]  ;;  %v710_v20 = vld [vmem:[#allocation11 + $0x78] sm:$0xff]  ;;  %v1705_v21 = vpack.c.bf16 %v551_v19, %v549_v15  ;;  %v548_v22 = vld [vmem:[#allocation9] sm:$0xff]  ;;  %v1779_v27 = vpack.c.bf16 %v705_v17, %v703_v14  ;;  %s1464_s21 = scalar_lea.sflag [#allocation5], %s2728_s11  ;;  %s2377_s4 = smov [#allocation15]  }
  0xf5   : > { %v550_v23 = vld [vmem:[#allocation9 + $0x10] sm:$0xff]  ;;  %v553_v25 = vld [vmem:[#allocation9 + $0x28] sm:$0xff]  ;;  %v555_v26 = vld [vmem:[#allocation9 + $0x38] sm:$0xff]  ;;  %v1781_v31 = vpack.c.bf16 %v710_v20, %v708_v18 }
  0xf6   : > { %v1707_v24 = vpack.c.bf16 %v550_v23, %v548_v22  ;;  %1706 = vmatprep.subr.bf16.mxu0 %v1705_v21  ;;  %v707_v28 = vld [vmem:[#allocation11 + $0x60] sm:$0xff]  ;;  %v1709_v29 = vpack.c.bf16 %v555_v26, %v553_v25  ;;  %v709_v32 = vld [vmem:[#allocation11 + $0x70] sm:$0xff]  ;;  %v712_v33 = vld [vmem:[#allocation11 + $0x88] sm:$0xff] }
  0xf7   : > { %1776 = vmatpush1.bf16.msra.mxu1 %v1775_v13  ;;  %v552_v30 = vld [vmem:[#allocation9 + $0x20] sm:$0xff]  ;;  %v554_v34 = vld [vmem:[#allocation9 + $0x30] sm:$0xff]  ;;  %v714_v35 = vld [vmem:[#allocation11 + $0x98] sm:$0xff]  ;;  %v1783_v42 = vpack.c.bf16 %v709_v32, %v707_v28  ;;  %p2934_p2 = scmp.ne.s32.totalorder %s2932_s13, 0 }
  0xf8   : > { %1778 = vmatprep.subr.bf16.mxu1 %v1777_v16  ;;  %1708 = vmatpush1.bf16.msra.mxu0 %v1707_v24  ;;  %v1711_v36 = vpack.c.bf16 %v554_v34, %v552_v30  ;;  %v557_v37 = vld [vmem:[#allocation9 + $0x48] sm:$0xff]  ;;  %v559_v38 = vld [vmem:[#allocation9 + $0x58] sm:$0xff]  ;;  %v556_v40 = vld [vmem:[#allocation9 + $0x40] sm:$0xff]  ;;  %v1785_v45 = vpack.c.bf16 %v714_v35, %v712_v33 }
  0xf9   : > { %1710 = vmatprep.subr.bf16.mxu0 %v1709_v29  ;;  %v1713_v39 = vpack.c.bf16 %v559_v38, %v557_v37  ;;  %v558_v41 = vld [vmem:[#allocation9 + $0x50] sm:$0xff]  ;;  %v711_v43 = vld [vmem:[#allocation11 + $0x80] sm:$0xff]  ;;  %v561_v44 = vld [vmem:[#allocation9 + $0x68] sm:$0xff]  ;;  %s2808_s26 = scalar_lea.hbm %s2933_s25, %s1664_s14 }
  0xfa   : > { %v713_v46 = vld [vmem:[#allocation11 + $0x90] sm:$0xff]  ;;  %v716_v47 = vld [vmem:[#allocation11 + $0xa8] sm:$0xff]  ;;  %v1715_v48 = vpack.c.bf16 %v558_v41, %v556_v40  ;;  %v563_v49 = vld [vmem:[#allocation9 + $0x78] sm:$0xff] }
  0xfb   : > { %1780 = vmatpush1.bf16.msra.mxu1 %v1779_v27  ;;  %v718_v50 = vld [vmem:[#allocation11 + $0xb8] sm:$0xff]  ;;  %v1717_v51 = vpack.c.bf16 %v563_v49, %v561_v44  ;;  %v560_v52 = vld [vmem:[#allocation9 + $0x60] sm:$0xff]  ;;  %v562_v53 = vld [vmem:[#allocation9 + $0x70] sm:$0xff]  ;;  %v1787_v56 = vpack.c.bf16 %v713_v46, %v711_v43 }
  0xfc   : > { %1782 = vmatprep.subr.bf16.mxu1 %v1781_v31  ;;  %1712 = vmatpush1.bf16.msra.mxu0 %v1711_v36  ;;  %v565_v54 = vld [vmem:[#allocation9 + $0x88] sm:$0xff]  ;;  %v567_v55 = vld [vmem:[#allocation9 + $0x98] sm:$0xff]  ;;  %v1789_v57 = vpack.c.bf16 %v718_v50, %v716_v47  ;;  %v715_v58 = vld [vmem:[#allocation11 + $0xa0] sm:$0xff]  ;;  %v1719_v61 = vpack.c.bf16 %v562_v53, %v560_v52 }
  0xfd   : > { %1714 = vmatprep.subr.bf16.mxu0 %v1713_v39  ;;  %v717_v59 = vld [vmem:[#allocation11 + $0xb0] sm:$0xff]  ;;  %v720_v60 = vld [vmem:[#allocation11 + $0xc8] sm:$0xff]  ;;  %v722_v62 = vld [vmem:[#allocation11 + $0xd8] sm:$0xff]  ;;  %v1721_v63 = vpack.c.bf16 %v567_v55, %v565_v54 }
  0xfe   : > { %v564_v0 = vld [vmem:[#allocation9 + $0x80] sm:$0xff]  ;;  %v566_v1 = vld [vmem:[#allocation9 + $0x90] sm:$0xff]  ;;  %v569_v2 = vld [vmem:[#allocation9 + $0xa8] sm:$0xff]  ;;  %v1791_v4 = vpack.c.bf16 %v717_v59, %v715_v58  ;;  %v1793_v5 = vpack.c.bf16 %v722_v62, %v720_v60 }
  0xff   : > { %1784 = vmatpush1.bf16.msra.mxu1 %v1783_v42  ;;  %v571_v3 = vld [vmem:[#allocation9 + $0xb8] sm:$0xff]  ;;  %v719_v6 = vld [vmem:[#allocation11 + $0xc0] sm:$0xff]  ;;  %v721_v7 = vld [vmem:[#allocation11 + $0xd0] sm:$0xff]  ;;  %v1723_v9 = vpack.c.bf16 %v566_v1, %v564_v0 }
 0x100   : > { %1786 = vmatprep.subr.bf16.mxu1 %v1785_v45  ;;  %1716 = vmatpush1.bf16.msra.mxu0 %v1715_v48  ;;  %v724_v8 = vld [vmem:[#allocation11 + $0xe8] sm:$0xff]  ;;  %v726_v10 = vld [vmem:[#allocation11 + $0xf8] sm:$0xff]  ;;  %v1725_v11 = vpack.c.bf16 %v571_v3, %v569_v2  ;;  %v568_v12 = vld [vmem:[#allocation9 + $0xa0] sm:$0xff]  ;;  %v1795_v16 = vpack.c.bf16 %v721_v7, %v719_v6 }
 0x101   : > { %1718 = vmatprep.subr.bf16.mxu0 %v1717_v51  ;;  %v570_v13 = vld [vmem:[#allocation9 + $0xb0] sm:$0xff]  ;;  %v573_v14 = vld [vmem:[#allocation9 + $0xc8] sm:$0xff]  ;;  %v575_v15 = vld [vmem:[#allocation9 + $0xd8] sm:$0xff]  ;;  %v1797_v17 = vpack.c.bf16 %v726_v10, %v724_v8 }
 0x102   : > { %v723_v18 = vld [vmem:[#allocation11 + $0xe0] sm:$0xff]  ;;  %v725_v19 = vld [vmem:[#allocation11 + $0xf0] sm:$0xff]  ;;  %v728_v20 = vld [vmem:[#allocation11 + $0x108] sm:$0xff]  ;;  %v1727_v21 = vpack.c.bf16 %v570_v13, %v568_v12  ;;  %v1729_v23 = vpack.c.bf16 %v575_v15, %v573_v14 }
 0x103   : > { %1788 = vmatpush1.bf16.msra.mxu1 %v1787_v56  ;;  %v730_v22 = vld [vmem:[#allocation11 + $0x118] sm:$0xff]  ;;  %v572_v24 = vld [vmem:[#allocation9 + $0xc0] sm:$0xff]  ;;  %v574_v25 = vld [vmem:[#allocation9 + $0xd0] sm:$0xff]  ;;  %v1799_v28 = vpack.c.bf16 %v725_v19, %v723_v18 }
 0x104   : > { %1790 = vmatprep.subr.bf16.mxu1 %v1789_v57  ;;  %1720 = vmatpush1.bf16.msra.mxu0 %v1719_v61  ;;  %v577_v26 = vld [vmem:[#allocation9 + $0xe8] sm:$0xff]  ;;  %v579_v27 = vld [vmem:[#allocation9 + $0xf8] sm:$0xff]  ;;  %v1801_v29 = vpack.c.bf16 %v730_v22, %v728_v20  ;;  %v727_v30 = vld [vmem:[#allocation11 + $0x100] sm:$0xff]  ;;  %v1731_v33 = vpack.c.bf16 %v574_v25, %v572_v24 }
 0x105   : > { %1722 = vmatprep.subr.bf16.mxu0 %v1721_v63  ;;  %v729_v31 = vld [vmem:[#allocation11 + $0x110] sm:$0xff]  ;;  %v732_v32 = vld [vmem:[#allocation11 + $0x128] sm:$0xff]  ;;  %v734_v34 = vld [vmem:[#allocation11 + $0x138] sm:$0xff]  ;;  %v1733_v35 = vpack.c.bf16 %v579_v27, %v577_v26 }
 0x106   : > { %v576_v36 = vld [vmem:[#allocation9 + $0xe0] sm:$0xff]  ;;  %v578_v37 = vld [vmem:[#allocation9 + $0xf0] sm:$0xff]  ;;  %v581_v38 = vld [vmem:[#allocation9 + $0x108] sm:$0xff]  ;;  %v1803_v40 = vpack.c.bf16 %v729_v31, %v727_v30  ;;  %v1805_v41 = vpack.c.bf16 %v734_v34, %v732_v32 }
 0x107   : > { %1792 = vmatpush1.bf16.msra.mxu1 %v1791_v4  ;;  %v583_v39 = vld [vmem:[#allocation9 + $0x118] sm:$0xff]  ;;  %v731_v42 = vld [vmem:[#allocation11 + $0x120] sm:$0xff]  ;;  %v733_v43 = vld [vmem:[#allocation11 + $0x130] sm:$0xff]  ;;  %v1735_v45 = vpack.c.bf16 %v578_v37, %v576_v36 }
 0x108   : > { %1794 = vmatprep.subr.bf16.mxu1 %v1793_v5  ;;  %1724 = vmatpush1.bf16.msra.mxu0 %v1723_v9  ;;  %v736_v44 = vld [vmem:[#allocation11 + $0x148] sm:$0xff]  ;;  %v738_v46 = vld [vmem:[#allocation11 + $0x158] sm:$0xff]  ;;  %v1737_v47 = vpack.c.bf16 %v583_v39, %v581_v38  ;;  %v580_v48 = vld [vmem:[#allocation9 + $0x100] sm:$0xff]  ;;  %v1807_v52 = vpack.c.bf16 %v733_v43, %v731_v42 }
 0x109   : > { %1726 = vmatprep.subr.bf16.mxu0 %v1725_v11  ;;  %v582_v49 = vld [vmem:[#allocation9 + $0x110] sm:$0xff]  ;;  %v585_v50 = vld [vmem:[#allocation9 + $0x128] sm:$0xff]  ;;  %v587_v51 = vld [vmem:[#allocation9 + $0x138] sm:$0xff]  ;;  %v1809_v54 = vpack.c.bf16 %v738_v46, %v736_v44 }
 0x10a   : > { %v735_v53 = vld [vmem:[#allocation11 + $0x140] sm:$0xff]  ;;  %v737_v55 = vld [vmem:[#allocation11 + $0x150] sm:$0xff]  ;;  %v740_v56 = vld [vmem:[#allocation11 + $0x168] sm:$0xff]  ;;  %v1739_v58 = vpack.c.bf16 %v582_v49, %v580_v48  ;;  %v1741_v59 = vpack.c.bf16 %v587_v51, %v585_v50 }
 0x10b   : > { %1796 = vmatpush1.bf16.msra.mxu1 %v1795_v16  ;;  %v742_v57 = vld [vmem:[#allocation11 + $0x178] sm:$0xff]  ;;  %v584_v60 = vld [vmem:[#allocation9 + $0x120] sm:$0xff]  ;;  %v586_v61 = vld [vmem:[#allocation9 + $0x130] sm:$0xff]  ;;  %v1811_v1 = vpack.c.bf16 %v737_v55, %v735_v53 }
 0x10c   : > { %1798 = vmatprep.subr.bf16.mxu1 %v1797_v17  ;;  %1728 = vmatpush1.bf16.msra.mxu0 %v1727_v21  ;;  %v541_v62 = vld [vmem:[%s2742_s17 + $0x8] sm:$0xff]  ;;  %v591_v0 = vld [vmem:[#allocation9 + $0x158] sm:$0xff]  ;;  %v1813_v2 = vpack.c.bf16 %v742_v57, %v740_v56  ;;  %v739_v3 = vld [vmem:[#allocation11 + $0x160] sm:$0xff]  ;;  %v1743_v6 = vpack.c.bf16 %v586_v61, %v584_v60 }
 0x10d   : > { %1730 = vmatprep.subr.bf16.mxu0 %v1729_v23  ;;  %v589_v63 = vld [vmem:[#allocation9 + $0x148] sm:$0xff]  ;;  %835 = vmatprep.mubr.f32.mxu1 %v541_v62  ;;  %v741_v4 = vld [vmem:[#allocation11 + $0x170] sm:$0xff]  ;;  %v746_v7 = vld [vmem:[#allocation11 + $0x198] sm:$0xff] }
 0x10e   : > { %v744_v5 = vld [vmem:[#allocation11 + $0x188] sm:$0xff]  ;;  %v1745_v8 = vpack.c.bf16 %v591_v0, %v589_v63  ;;  %v588_v9 = vld [vmem:[#allocation9 + $0x140] sm:$0xff]  ;;  %v590_v10 = vld [vmem:[#allocation9 + $0x150] sm:$0xff]  ;;  %v1815_v13 = vpack.c.bf16 %v741_v4, %v739_v3 }
 0x10f   : > { %1800 = vmatpush1.bf16.msra.mxu1 %v1799_v28  ;;  %v593_v11 = vld [vmem:[#allocation9 + $0x168] sm:$0xff]  ;;  %v595_v12 = vld [vmem:[#allocation9 + $0x178] sm:$0xff]  ;;  %v1817_v15 = vpack.c.bf16 %v746_v7, %v744_v5  ;;  %v743_v16 = vld [vmem:[#allocation11 + $0x180] sm:$0xff]  ;;  %v1747_v19 = vpack.c.bf16 %v590_v10, %v588_v9 }
 0x110   : > { %1802 = vmatprep.subr.bf16.mxu1 %v1801_v29  ;;  %1732 = vmatpush1.bf16.msra.mxu0 %v1731_v33  ;;  %v539_v14 = vld [vmem:[%s2734_s27 + $0x8] sm:$0xff]  ;;  %v745_v17 = vld [vmem:[#allocation11 + $0x190] sm:$0xff]  ;;  %v1749_v21 = vpack.c.bf16 %v595_v12, %v593_v11  ;;  %v592_v22 = vld [vmem:[#allocation9 + $0x160] sm:$0xff] }
 0x111   : > { %1734 = vmatprep.subr.bf16.mxu0 %v1733_v35  ;;  %v748_v18 = vld [vmem:[#allocation11 + $0x1a8] sm:$0xff]  ;;  %v750_v20 = vld [vmem:[#allocation11 + $0x1b8] sm:$0xff]  ;;  %v594_v23 = vld [vmem:[#allocation9 + $0x170] sm:$0xff]  ;;  %688 = vmatprep.mubr.f32.mxu0 %v539_v14  ;;  %v1819_v26 = vpack.c.bf16 %v745_v17, %v743_v16 }
 0x112   : > { %v597_v24 = vld [vmem:[#allocation9 + $0x188] sm:$0xff]  ;;  %v599_v25 = vld [vmem:[#allocation9 + $0x198] sm:$0xff]  ;;  %v1821_v27 = vpack.c.bf16 %v750_v20, %v748_v18  ;;  %v747_v28 = vld [vmem:[#allocation11 + $0x1a0] sm:$0xff]  ;;  %v1751_v31 = vpack.c.bf16 %v594_v23, %v592_v22 }
 0x113   : > { %1804 = vmatpush1.bf16.msra.mxu1 %v1803_v40  ;;  %v749_v29 = vld [vmem:[#allocation11 + $0x1b0] sm:$0xff]  ;;  %v752_v30 = vld [vmem:[#allocation11 + $0x1c8] sm:$0xff]  ;;  %v754_v32 = vld [vmem:[#allocation11 + $0x1d8] sm:$0xff]  ;;  %v1753_v33 = vpack.c.bf16 %v599_v25, %v597_v24 }
 0x114   : > { %1806 = vmatprep.subr.bf16.mxu1 %v1805_v41  ;;  %1736 = vmatpush1.bf16.msra.mxu0 %v1735_v45  ;;  %v596_v34 = vld [vmem:[#allocation9 + $0x180] sm:$0xff]  ;;  %v598_v35 = vld [vmem:[#allocation9 + $0x190] sm:$0xff]  ;;  %v601_v36 = vld [vmem:[#allocation9 + $0x1a8] sm:$0xff]  ;;  %v1823_v38 = vpack.c.bf16 %v749_v29, %v747_v28  ;;  %v1825_v39 = vpack.c.bf16 %v754_v32, %v752_v30 }
 0x115   : > { %1738 = vmatprep.subr.bf16.mxu0 %v1737_v47  ;;  %v603_v37 = vld [vmem:[#allocation9 + $0x1b8] sm:$0xff]  ;;  %v751_v40 = vld [vmem:[#allocation11 + $0x1c0] sm:$0xff]  ;;  %v753_v41 = vld [vmem:[#allocation11 + $0x1d0] sm:$0xff]  ;;  %v1755_v43 = vpack.c.bf16 %v598_v35, %v596_v34 }
 0x116   : > { %v756_v42 = vld [vmem:[#allocation11 + $0x1e8] sm:$0xff]  ;;  %v758_v44 = vld [vmem:[#allocation11 + $0x1f8] sm:$0xff]  ;;  %v1757_v45 = vpack.c.bf16 %v603_v37, %v601_v36  ;;  %v600_v46 = vld [vmem:[#allocation9 + $0x1a0] sm:$0xff]  ;;  %v1827_v50 = vpack.c.bf16 %v753_v41, %v751_v40 }
 0x117   : > { %1808 = vmatpush1.bf16.msra.mxu1 %v1807_v52  ;;  %v602_v47 = vld [vmem:[#allocation9 + $0x1b0] sm:$0xff]  ;;  %v605_v48 = vld [vmem:[#allocation9 + $0x1c8] sm:$0xff]  ;;  %v607_v49 = vld [vmem:[#allocation9 + $0x1d8] sm:$0xff]  ;;  %v1829_v51 = vpack.c.bf16 %v758_v44, %v756_v42 }
 0x118   : > { %1810 = vmatprep.subr.bf16.mxu1 %v1809_v54  ;;  %1740 = vmatpush1.bf16.msra.mxu0 %v1739_v58  ;;  %v755_v52 = vld [vmem:[#allocation11 + $0x1e0] sm:$0xff]  ;;  %v757_v53 = vld [vmem:[#allocation11 + $0x1f0] sm:$0xff]  ;;  %v1759_v54 = vpack.c.bf16 %v602_v47, %v600_v46  ;;  %v1761_v55 = vpack.c.bf16 %v607_v49, %v605_v48  ;;  %v609_v58 = vld [vmem:[#allocation9 + $0x1e8] sm:$0xff] }
 0x119   : > { %1742 = vmatprep.subr.bf16.mxu0 %v1741_v59  ;;  %v604_v56 = vld [vmem:[#allocation9 + $0x1c0] sm:$0xff]  ;;  %v606_v57 = vld [vmem:[#allocation9 + $0x1d0] sm:$0xff]  ;;  %v611_v59 = vld [vmem:[#allocation9 + $0x1f8] sm:$0xff]  ;;  %v1831_v60 = vpack.c.bf16 %v757_v53, %v755_v52 }
 0x11a   : > { %v1763_v61 = vpack.c.bf16 %v606_v57, %v604_v56  ;;  %v1765_v62 = vpack.c.bf16 %v611_v59, %v609_v58  ;;  %v608_v63 = vld [vmem:[#allocation9 + $0x1e0] sm:$0xff]  ;;  %v610_v0 = vld [vmem:[#allocation9 + $0x1f0] sm:$0xff]  ;;  %v543_v4 = vld [vmem:[%s2742_s17 + $0x18] sm:$0xff] }
 0x11b   : > { %1812 = vmatpush1.bf16.msra.mxu1 %v1811_v1  ;;  %v849_v1 = vld [vmem:[#allocation12 + $0x8] sm:$0xff]  ;;  %v540_v3 = vld [vmem:[%s2742_s17] sm:$0xff]  ;;  %v1767_v5 = vpack.c.bf16 %v610_v0, %v608_v63  ;;  %v855_v10 = vld [vmem:[#allocation12 + $0x38] sm:$0xff] }
 0x11c   : > { %1814 = vmatprep.subr.bf16.mxu1 %v1813_v2  ;;  %1744 = vmatpush1.bf16.msra.mxu0 %v1743_v6  ;;  %v851_v2 = vld [vmem:[#allocation12 + $0x18] sm:$0xff]  ;;  %v848_v7 = vld [vmem:[#allocation12] sm:$0xff]  ;;  %v853_v9 = vld [vmem:[#allocation12 + $0x28] sm:$0xff] }
 0x11d   : > { %1746 = vmatprep.subr.bf16.mxu0 %v1745_v8  ;;  %v1833_v6 = vpack.c.bf16 %v851_v2, %v849_v1  ;;  %v850_v8 = vld [vmem:[#allocation12 + $0x10] sm:$0xff]  ;;  %v1837_v14 = vpack.c.bf16 %v855_v10, %v853_v9  ;;  %v857_v17 = vld [vmem:[#allocation12 + $0x48] sm:$0xff]  ;;  %v859_v18 = vld [vmem:[#allocation12 + $0x58] sm:$0xff] }
 0x11e   : > { %v542_v11 = vld [vmem:[%s2742_s17 + $0x10] sm:$0xff]  ;;  %v1841_v20 = vpack.c.bf16 %v859_v18, %v857_v17  ;;  %v861_v23 = vld [vmem:[#allocation12 + $0x68] sm:$0xff]  ;;  %v863_v24 = vld [vmem:[#allocation12 + $0x78] sm:$0xff]  ;;  %s2285_s17 = scalar_lea.vmem %s2810_s29, 256 }
 0x11f   : > { %1816 = vmatpush1.bf16.msra.mxu1 %v1815_v13  ;;  %v538_v12 = vld [vmem:[%s2734_s27] sm:$0xff]  ;;  %v1835_v13 = vpack.c.bf16 %v850_v8, %v848_v7  ;;  %v865_v29 = vld [vmem:[#allocation12 + $0x88] sm:$0xff]  ;;  %v867_v30 = vld [vmem:[#allocation12 + $0x98] sm:$0xff]  ;;  %p2286_p5 = scmp.ne.s32.totalorder %s2810_s29, %s2285_s17 }
 0x120   : > { %1818 = vmatprep.subr.bf16.mxu1 %v1817_v15  ;;  %1748 = vmatpush1.bf16.msra.mxu0 %v1747_v19  ;;  %v852_v15 = vld [vmem:[#allocation12 + $0x20] sm:$0xff]  ;;  %v854_v16 = vld [vmem:[#allocation12 + $0x30] sm:$0xff]  ;;  %v1849_v32 = vpack.c.bf16 %v867_v30, %v865_v29  ;;  %v869_v35 = vld [vmem:[#allocation12 + $0xa8] sm:$0xff] }
 0x121   : > { %1750 = vmatprep.subr.bf16.mxu0 %v1749_v21  ;;  %v1839_v19 = vpack.c.bf16 %v854_v16, %v852_v15  ;;  %v856_v21 = vld [vmem:[#allocation12 + $0x40] sm:$0xff]  ;;  %v858_v22 = vld [vmem:[#allocation12 + $0x50] sm:$0xff]  ;;  %v871_v36 = vld [vmem:[#allocation12 + $0xb8] sm:$0xff]  ;;  %p2287_p0 = pnand %p2286_p5, %p2934_p2 }
 0x122   : > { %v1843_v25 = vpack.c.bf16 %v858_v22, %v856_v21  ;;  %v862_v28 = vld [vmem:[#allocation12 + $0x70] sm:$0xff]  ;;  %v873_v41 = vld [vmem:[#allocation12 + $0xc8] sm:$0xff]  ;;  %v875_v42 = vld [vmem:[#allocation12 + $0xd8] sm:$0xff] }
 0x123   : > { %1820 = vmatpush1.bf16.msra.mxu1 %v1819_v26  ;;  %v1845_v26 = vpack.c.bf16 %v863_v24, %v861_v23  ;;  %v866_v34 = vld [vmem:[#allocation12 + $0x90] sm:$0xff]  ;;  %v1857_v44 = vpack.c.bf16 %v875_v42, %v873_v41  ;;  %v877_v47 = vld [vmem:[#allocation12 + $0xe8] sm:$0xff]  ;;  %v879_v48 = vld [vmem:[#allocation12 + $0xf8] sm:$0xff]  ;;  %v2374_v42 = vmov 0.0|0.0   ;;  %p2288_p4 = pneg %p2287_p0 }
 0x124   : > { %1822 = vmatprep.subr.bf16.mxu1 %v1821_v27  ;;  %1752 = vmatpush1.bf16.msra.mxu0 %v1751_v31  ;;  %v860_v27 = vld [vmem:[#allocation12 + $0x60] sm:$0xff]  ;;  %v870_v40 = vld [vmem:[#allocation12 + $0xb0] sm:$0xff]  ;;  %v881_v53 = vld [vmem:[#allocation12 + $0x108] sm:$0xff] }
 0x125   : > { %1754 = vmatprep.subr.bf16.mxu0 %v1753_v33  ;;  %v1847_v31 = vpack.c.bf16 %v862_v28, %v860_v27  ;;  %v864_v33 = vld [vmem:[#allocation12 + $0x80] sm:$0xff]  ;;  %v874_v46 = vld [vmem:[#allocation12 + $0xd0] sm:$0xff]  ;;  %v885_v59 = vld [vmem:[#allocation12 + $0x128] sm:$0xff] }
 0x126   : > { %v1851_v37 = vpack.c.bf16 %v866_v34, %v864_v33  ;;  %v878_v52 = vld [vmem:[#allocation12 + $0xf0] sm:$0xff]  ;;  %v880_v57 = vld [vmem:[#allocation12 + $0x100] sm:$0xff]  ;;  %v889_v1 = vld [vmem:[#allocation12 + $0x148] sm:$0xff] }
 0x127   : > { %1824 = vmatpush1.bf16.msra.mxu1 %v1823_v38  ;;  %v1853_v38 = vpack.c.bf16 %v871_v36, %v869_v35  ;;  %v882_v58 = vld [vmem:[#allocation12 + $0x110] sm:$0xff]  ;;  %v884_v63 = vld [vmem:[#allocation12 + $0x120] sm:$0xff]  ;;  %v891_v2 = vld [vmem:[#allocation12 + $0x158] sm:$0xff] }
 0x128   : > { %1826 = vmatprep.subr.bf16.mxu1 %v1825_v39  ;;  %1756 = vmatpush1.bf16.msra.mxu0 %v1755_v43  ;;  %v868_v39 = vld [vmem:[#allocation12 + $0xa0] sm:$0xff]  ;;  %v886_v0 = vld [vmem:[#allocation12 + $0x130] sm:$0xff]  ;;  %v893_v7 = vld [vmem:[#allocation12 + $0x168] sm:$0xff] }
 0x129   : > { %1758 = vmatprep.subr.bf16.mxu0 %v1757_v45  ;;  %v1855_v43 = vpack.c.bf16 %v870_v40, %v868_v39  ;;  %v872_v45 = vld [vmem:[#allocation12 + $0xc0] sm:$0xff]  ;;  %v895_v8 = vld [vmem:[#allocation12 + $0x178] sm:$0xff]  ;;  %v898_v18 = vld [vmem:[#allocation12 + $0x190] sm:$0xff] }
 0x12a   : > { %v1859_v49 = vpack.c.bf16 %v874_v46, %v872_v45  ;;  %v1877_v10 = vpack.c.bf16 %v895_v8, %v893_v7  ;;  %v896_v17 = vld [vmem:[#allocation12 + $0x180] sm:$0xff]  ;;  %v902_v24 = vld [vmem:[#allocation12 + $0x1b0] sm:$0xff]  ;;  %v911_v33 = vld [vmem:[#allocation12 + $0x1f8] sm:$0xff] }
 0x12b   : > { %1828 = vmatpush1.bf16.msra.mxu1 %v1827_v50  ;;  %v1861_v50 = vpack.c.bf16 %v879_v48, %v877_v47  ;;  %v1883_v21 = vpack.c.bf16 %v898_v18, %v896_v17  ;;  %v900_v23 = vld [vmem:[#allocation12 + $0x1a0] sm:$0xff]  ;;  %v906_v30 = vld [vmem:[#allocation12 + $0x1d0] sm:$0xff]  ;;  %v547_v40 = vld [vmem:[%s2748_s12 + $0x18] sm:$0xff] }
 0x12c   : > { %1830 = vmatprep.subr.bf16.mxu1 %v1829_v51  ;;  %1760 = vmatpush1.bf16.msra.mxu0 %v1759_v54  ;;  %v876_v51 = vld [vmem:[#allocation12 + $0xe0] sm:$0xff]  ;;  %v883_v54 = vld [vmem:[#allocation12 + $0x118] sm:$0xff]  ;;  %v1887_v27 = vpack.c.bf16 %v902_v24, %v900_v23  ;;  %v910_v36 = vld [vmem:[#allocation12 + $0x1f0] sm:$0xff] }
 0x12d   : > { %1762 = vmatprep.subr.bf16.mxu0 %v1761_v55  ;;  %v1863_v55 = vpack.c.bf16 %v878_v52, %v876_v51  ;;  %v1865_v56 = vpack.c.bf16 %v883_v54, %v881_v53  ;;  %v904_v29 = vld [vmem:[#allocation12 + $0x1c0] sm:$0xff]  ;;  %v546_v41 = vld [vmem:[%s2748_s12 + $0x10] sm:$0xff] }
 0x12e   : > { %v908_v35 = vld [vmem:[#allocation12 + $0x1e0] sm:$0xff] }
 0x12f   : > { %1832 = vmatpush1.bf16.msra.mxu1 %v1831_v60  ;;  %v887_v60 = vld [vmem:[#allocation12 + $0x138] sm:$0xff]  ;;  %v544_v39 = vld [vmem:[%s2748_s12] sm:$0xff] }
 0x130   : > { %1764 = vmatpush1.bf16.msra.mxu0 %v1763_v61  ;;  %v1867_v61 = vpack.c.bf16 %v882_v58, %v880_v57  ;;  %1897 = vmatprep.subr.bf16.mxu1 %v2374_v42  ;;  %v759_v47 = vld [vmem:[%s2928_s7] sm:$0x3] }
 0x131   : > { %1766 = vmatprep.subr.bf16.mxu0 %v1765_v62  ;;  %v1869_v62 = vpack.c.bf16 %v887_v60, %v885_v59  ;;  %v612_v57 = vld [vmem:[%s2929_s30] sm:$0x3] }
 0x132   : > { %836 = vmatmul.mubr.f32.vlgmr.msra.gmra.mrb[0].mxu1 %v540_v3  ;;  %v1871_v3 = vpack.c.bf16 %v886_v0, %v884_v63 }
 0x133   : > { %841 = vmatprep.mubr.f32.mxu1 %v543_v4  ;;  %v1873_v4 = vpack.c.bf16 %v891_v2, %v889_v1 }
 0x134   : > { %1768 = vmatpush1.bf16.msra.mxu0 %v1767_v5  ;;  %v888_v5 = vld [vmem:[#allocation12 + $0x140] sm:$0xff] }
 0x135   : > { %1834 = vmatprep.subr.bf16.mxu0 %v1833_v6  ;;  %v890_v6 = vld [vmem:[#allocation12 + $0x150] sm:$0xff] }
 0x136   : > { %842 = vmatmul.mubr.f32.gmra.mrb[2].mxu1 %v542_v11  ;;  %v1875_v9 = vpack.c.bf16 %v890_v6, %v888_v5  ;;  %v892_v11 = vld [vmem:[#allocation12 + $0x160] sm:$0xff] }
 0x137   : > { %689 = vmatmul.mubr.f32.vlgmr.msra.gmra.mrb[0].mxu0 %v538_v12  ;;  %v894_v12 = vld [vmem:[#allocation12 + $0x170] sm:$0xff] }
 0x138   : > { %1836 = vmatpush1.bf16.msra.mxu0 %v1835_v13  ;;  %v897_v13 = vld [vmem:[#allocation12 + $0x188] sm:$0xff]  ;;  %v1879_v15 = vpack.c.bf16 %v894_v12, %v892_v11 }
 0x139   : > { %1838 = vmatprep.subr.bf16.mxu0 %v1837_v14  ;;  %v899_v14 = vld [vmem:[#allocation12 + $0x198] sm:$0xff] }
 0x13a   : > { %v1881_v16 = vpack.c.bf16 %v899_v14, %v897_v13 }
 0x13c   : > { %1840 = vmatpush1.bf16.msra.mxu0 %v1839_v19  ;;  %v901_v19 = vld [vmem:[#allocation12 + $0x1a8] sm:$0xff] }
 0x13d   : > { %1842 = vmatprep.subr.bf16.mxu0 %v1841_v20  ;;  %v903_v20 = vld [vmem:[#allocation12 + $0x1b8] sm:$0xff] }
 0x13e   : > { %v1885_v22 = vpack.c.bf16 %v903_v20, %v901_v19 }
 0x140   : > { %1844 = vmatpush1.bf16.msra.mxu0 %v1843_v25  ;;  %v905_v25 = vld [vmem:[#allocation12 + $0x1c8] sm:$0xff] }
 0x141   : > { %1846 = vmatprep.subr.bf16.mxu0 %v1845_v26  ;;  %v907_v26 = vld [vmem:[#allocation12 + $0x1d8] sm:$0xff] }
 0x142   : > { %v1889_v28 = vpack.c.bf16 %v907_v26, %v905_v25 }
 0x144   : > { %1848 = vmatpush1.bf16.msra.mxu0 %v1847_v31  ;;  %v1891_v31 = vpack.c.bf16 %v906_v30, %v904_v29 }
 0x145   : > { %1850 = vmatprep.subr.bf16.mxu0 %v1849_v32  ;;  %v909_v32 = vld [vmem:[#allocation12 + $0x1e8] sm:$0xff] }
 0x146   : > { %v1893_v34 = vpack.c.bf16 %v911_v33, %v909_v32  ;;  %v1315_v33 = vld [vmem:[#allocation14 + $0x8] sm:$0xff] }
 0x148   : > { %1852 = vmatpush1.bf16.msra.mxu0 %v1851_v37  ;;  %v1895_v37 = vpack.c.bf16 %v910_v36, %v908_v35 }
 0x149   : > { %1854 = vmatprep.subr.bf16.mxu0 %v1853_v38  ;;  %v545_v38 = vld [vmem:[%s2748_s12 + $0x8] sm:$0xff]  ;;  %s2289_s12 = sshll.u32 %s2377_s4, 4  ;;  %s2290_s12 = int_to_ptr.vmem [resolvable:$false] %s2289_s12 }
 0x14a   : > { %988 = vmatprep.mubr.f32.mxu0 %v545_v38  ;;  %s2291_s23 = scalar_lea.vmem %s2290_s12, 512  ;;  %p2292_p11 = scmp.lt.s32.totalorder %s2810_s29, %s2290_s12 }
 0x14b   : > { %p2293_p7 = scmp.lt.s32.totalorder %s2291_s23, %s2285_s17 }
 0x14c   : > { %1856 = vmatpush1.bf16.msra.mxu0 %v1855_v43  ;;  %v2376_v43 = vmov 0.0  }
 0x14d   : > { %1858 = vmatprep.subr.bf16.mxu0 %v1857_v44  ;;  %1681 = vmatprep.mubr.msk.f32.mxu1 %vm2375_vm0, %v2376_v43  ;;  %v614_v44 = vlaneseq  ;;  %p2294_p9 = por %p2293_p7, %p2292_p11 }
 0x14f   : > { %v615_v45 = vshrl.u32 %v614_v44, 7  ;;  %p2295_p12 = pnand %p2294_p9, %p2288_p4 }
 0x150   : > { %1860 = vmatpush1.bf16.msra.mxu0 %v1859_v49 }
 0x151   : > { %1862 = vmatprep.subr.bf16.mxu0 %v1861_v50  ;;  %v2770_v46 = vsub.s32 0, %v615_v45  ;;  %v2775_v48 = vsub.s32 1, %v615_v45 }
 0x153   : > { %v764_v50 = vrot.slane %v759_v47, %v2770_v46  ;;  %v768_v52 = vrot.slane %v759_v47, %v2775_v48  ;;  %v617_v0 = vrot.slane %v612_v57, %v2770_v46  ;;  %v621_v1 = vrot.slane %v612_v57, %v2775_v48  ;;  %v1324_v57 = vld [vmem:[#allocation14 + $0x50] sm:$0xff] }
 0x154   : > { %1864 = vmatpush1.bf16.msra.mxu0 %v1863_v55 }
 0x155   : > { %1866 = vmatprep.subr.bf16.mxu0 %v1865_v56 }
 0x158   : > { %1868 = vmatpush1.bf16.msra.mxu0 %v1867_v61 }
 0x159   : > { %1870 = vmatprep.subr.bf16.mxu0 %v1869_v62 }
 0x15c   : > { %1872 = vmatpush1.bf16.msra.mxu0 %v1871_v3 }
 0x15d   : > { %1874 = vmatprep.subr.bf16.mxu0 %v1873_v4  ;;  %v912_v4 = vld [vmem:[%s2930_s16] sm:$0x3] }
 0x15e   : > { %v917_v5 = vrot.slane %v912_v4, %v2770_v46  ;;  %v921_v7 = vrot.slane %v912_v4, %v2775_v48  ;;  %v1330_v4 = vld [vmem:[#allocation14 + $0x80] sm:$0xff] }
 0x160   : > { %1876 = vmatpush1.bf16.msra.mxu0 %v1875_v9 }
 0x161   : > { %1878 = vmatprep.subr.bf16.mxu0 %v1877_v10 }
 0x164   : > { %1880 = vmatpush1.bf16.msra.mxu0 %v1879_v15 }
 0x165   : > { %1882 = vmatprep.subr.bf16.mxu0 %v1881_v16 }
 0x168   : > { %1884 = vmatpush1.bf16.msra.mxu0 %v1883_v21 }
 0x169   : > { %1886 = vmatprep.subr.bf16.mxu0 %v1885_v22 }
 0x16c   : > { %1888 = vmatpush1.bf16.msra.mxu0 %v1887_v27 }
 0x16d   : > { %1890 = vmatprep.subr.bf16.mxu0 %v1889_v28 }
 0x170   : > { %1892 = vmatpush1.bf16.msra.mxu0 %v1891_v31 }
 0x171   : > { %1894 = vmatprep.subr.bf16.mxu0 %v1893_v34  ;;  %v1317_v34 = vld [vmem:[#allocation14 + $0x18] sm:$0xff] }
 0x172   : > { %v1909_v35 = vpack.c.bf16 %v1317_v34, %v1315_v33  ;;  %v1350_v34 = vld [vmem:[#allocation14 + $0x120] sm:$0xff] }
 0x174   : > { %1896 = vmatpush1.bf16.msra.mxu0 %v1895_v37 }
 0x175   : > { %1903 = vmatprep.subr.bf16.mxu0 %v2374_v42 }
 0x177   : > { %989 = vmatmul.mubr.f32.vlgmr.msra.gmra.mrb[2].mxu0 %v544_v39 }
 0x178   : > { %994 = vmatprep.mubr.f32.mxu0 %v547_v40  ;;  %v1314_v40 = vld [vmem:[#allocation14] sm:$0xff] }
 0x17b   : > { %995 = vmatmul.mubr.f32.gmra.mrb[4].mxu0 %v546_v41  ;;  %v1316_v41 = vld [vmem:[#allocation14 + $0x10] sm:$0xff] }
 0x17c   : > { %1695 = vmatprep.mubr.msk.f32.mxu0 %vm2375_vm0, %v2376_v43  ;;  %v1911_v45 = vpack.c.bf16 %v1316_v41, %v1314_v40  ;;  %v1354_v40 = vld [vmem:[#allocation14 + $0x140] sm:$0xff]  ;;  %v1356_v41 = vld [vmem:[#allocation14 + $0x150] sm:$0xff] }
 0x205   : > { %v837_v49 = vpop.f32.mrb[0].mxu1 }
 0x206   : > { %v839_v51 = vpop.f32.mrb[1].mxu1  ;;  %v838_v54 = vadd.f32 %v837_v49, %v764_v50 }
 0x207   : > { %v840_v59 = vadd.f32 %v839_v51, %v768_v52  ;;  %v1320_v51 = vld [vmem:[#allocation14 + $0x30] sm:$0xff] }
 0x209   : > { %v843_v53 = vpop.f32.mrb[2].mxu1 }
 0x20a   : > { %v844_v55 = vadd.f32 %v843_v53, %v764_v50  ;;  %v845_v56 = vpop.f32.mrb[3].mxu1  ;;  %v690_v58 = vpop.f32.mrb[0].mxu0  ;;  %v1318_v50 = vld [vmem:[#allocation14 + $0x20] sm:$0xff]  ;;  %v1325_v53 = vld [vmem:[#allocation14 + $0x58] sm:$0xff] }
 0x20b   : > { %v846_v60 = vadd.f32 %v845_v56, %v768_v52  ;;  %v692_v61 = vpop.f32.mrb[1].mxu0  ;;  %v691_v2 = vadd.f32 %v690_v58, %v617_v0  ;;  %v1323_v52 = vld [vmem:[#allocation14 + $0x48] sm:$0xff]  ;;  %v1322_v56 = vld [vmem:[#allocation14 + $0x40] sm:$0xff] }
 0x20c   : > { %v1898_v62 = vpack.c.bf16 %v844_v55, %v838_v54  ;;  %v693_v3 = vadd.f32 %v692_v61, %v621_v1  ;;  %v1915_v54 = vpack.c.bf16 %v1320_v51, %v1318_v50  ;;  %v1917_v55 = vpack.c.bf16 %v1325_v53, %v1323_v52  ;;  %v1327_v58 = vld [vmem:[#allocation14 + $0x68] sm:$0xff]  ;;  %v1333_v1 = vld [vmem:[#allocation14 + $0x98] sm:$0xff] }
 0x20d   : > { %v1904_v63 = vpack.c.bf16 %v846_v60, %v840_v59  ;;  %v1329_v59 = vld [vmem:[#allocation14 + $0x78] sm:$0xff]  ;;  %v1919_v60 = vpack.c.bf16 %v1324_v57, %v1322_v56  ;;  %v1331_v0 = vld [vmem:[#allocation14 + $0x88] sm:$0xff] }
 0x20e   : > { %1899 = vmatpush3.bf16.xpose.msra.mxu1 %v1898_v62  ;;  %v1921_v61 = vpack.c.bf16 %v1329_v59, %v1327_v58  ;;  %v1326_v62 = vld [vmem:[#allocation14 + $0x60] sm:$0xff]  ;;  %v1363_v50 = vld [vmem:[#allocation14 + $0x188] sm:$0xff]  ;;  %v1365_v51 = vld [vmem:[#allocation14 + $0x198] sm:$0xff] }
 0x20f   : > { %1905 = vmatpush3.bf16.xpose.msra.mxu0 %v1904_v63  ;;  %1900 = vmatprep.subr.bf16.mxu1 %v2374_v42  ;;  %v1328_v63 = vld [vmem:[#allocation14 + $0x70] sm:$0xff]  ;;  %v1957_v53 = vpack.c.bf16 %v1365_v51, %v1363_v50  ;;  %v1367_v56 = vld [vmem:[#allocation14 + $0x1a8] sm:$0xff]  ;;  %v1369_v57 = vld [vmem:[#allocation14 + $0x1b8] sm:$0xff] }
 0x210   : > { %1906 = vmatprep.subr.bf16.mxu0 %v2374_v42  ;;  %v1319_v42 = vld [vmem:[#allocation14 + $0x28] sm:$0xff]  ;;  %v1961_v59 = vpack.c.bf16 %v1369_v57, %v1367_v56 }
 0x215   : > { %1682 = vmatmul.mubr.f32.vlgmr.msra.gmra.mrb[4].mxu1 %v691_v2  ;;  %v1923_v2 = vpack.c.bf16 %v1328_v63, %v1326_v62  ;;  %v1371_v62 = vld [vmem:[#allocation14 + $0x1c8] sm:$0xff]  ;;  %v1373_v63 = vld [vmem:[#allocation14 + $0x1d8] sm:$0xff] }
 0x216   : > { %1696 = vmatmul.mubr.f32.vlgmr.msra.gmra.mrb[6].mxu0 %v693_v3  ;;  %1688 = vmatprep.mubr.msk.f32.mxu1 %vm2375_vm0, %v2376_v43  ;;  %v1925_v3 = vpack.c.bf16 %v1333_v1, %v1331_v0  ;;  %v1965_v1 = vpack.c.bf16 %v1373_v63, %v1371_v62 }
 0x217   : > { %1702 = vmatprep.mubr.msk.f32.mxu0 %vm2375_vm0, %v2376_v43  ;;  %v1321_v43 = vld [vmem:[#allocation14 + $0x38] sm:$0xff] }
 0x218   : > { %v1913_v49 = vpack.c.bf16 %v1321_v43, %v1319_v42  ;;  %v1359_v42 = vld [vmem:[#allocation14 + $0x168] sm:$0xff]  ;;  %v1361_v43 = vld [vmem:[#allocation14 + $0x178] sm:$0xff] }
 0x24a   : > { %v990_v6 = vpop.f32.mrb[2].mxu0 }
 0x24b   : > { %v992_v8 = vpop.f32.mrb[3].mxu0  ;;  %v991_v9 = vadd.f32 %v990_v6, %v917_v5  ;;  %v1335_v6 = vld [vmem:[#allocation14 + $0xa8] sm:$0xff] }
 0x24c   : > { %v993_v10 = vadd.f32 %v992_v8, %v921_v7 }
 0x24e   : > { %v996_v11 = vpop.f32.mrb[4].mxu0 }
 0x24f   : > { %v997_v12 = vadd.f32 %v996_v11, %v917_v5  ;;  %v998_v13 = vpop.f32.mrb[5].mxu0  ;;  %v1332_v5 = vld [vmem:[#allocation14 + $0x90] sm:$0xff] }
 0x250   : > { %v999_v14 = vadd.f32 %v998_v13, %v921_v7  ;;  %v1337_v7 = vld [vmem:[#allocation14 + $0xb8] sm:$0xff]  ;;  %v1927_v8 = vpack.c.bf16 %v1332_v5, %v1330_v4  ;;  %v1336_v11 = vld [vmem:[#allocation14 + $0xb0] sm:$0xff]  ;;  %v1375_v5 = vld [vmem:[#allocation14 + $0x1e8] sm:$0xff] }
 0x251   : > { %v1901_v15 = vpack.c.bf16 %v997_v12, %v991_v9  ;;  %v1929_v9 = vpack.c.bf16 %v1337_v7, %v1335_v6  ;;  %v1339_v12 = vld [vmem:[#allocation14 + $0xc8] sm:$0xff]  ;;  %v1341_v13 = vld [vmem:[#allocation14 + $0xd8] sm:$0xff] }
 0x252   : > { %v1907_v16 = vpack.c.bf16 %v999_v14, %v993_v10  ;;  %v1334_v10 = vld [vmem:[#allocation14 + $0xa0] sm:$0xff]  ;;  %v1377_v6 = vld [vmem:[#allocation14 + $0x1f8] sm:$0xff] }
 0x253   : > { %1902 = vmatpush3.bf16.msra.mxu1 %v1901_v15  ;;  %v1931_v14 = vpack.c.bf16 %v1336_v11, %v1334_v10  ;;  %v1933_v15 = vpack.c.bf16 %v1341_v13, %v1339_v12  ;;  %v1969_v7 = vpack.c.bf16 %v1377_v6, %v1375_v5 }
 0x254   : > { %1908 = vmatpush3.bf16.msra.mxu0 %v1907_v16  ;;  %1910 = vmatprep.subr.bf16.mxu1 %v1909_v35  ;;  %v1338_v16 = vld [vmem:[#allocation14 + $0xc0] sm:$0xff]  ;;  %v1352_v35 = vld [vmem:[#allocation14 + $0x130] sm:$0xff] }
 0x2e8   : > { %v1067_v17 = vpop.f32.mrb[4].mxu1 }
 0x2e9   : > { %v1683_v18 = vpop.f32.mrb[5].mxu1  ;;  %v1223_v19 = vpop.f32.mrb[6].mxu0  ;;  %v1072_v22 = vsel %vm1071_vm1, %v1067_v17, -inf }
 0x2ea   : > { %v1697_v20 = vpop.f32.mrb[7].mxu0  ;;  %v1227_v21 = vsel %vm1071_vm1, %v1223_v19, -inf  ;;  %v1343_v18 = vld [vmem:[#allocation14 + $0xe8] sm:$0xff] }
 0x2eb   : > { %1228 = vmax.xlane.f32.xlu0 %v1227_v21 }
 0x2ef   : > { %1073 = vmax.xlane.f32.xlu0 %v1072_v22  ;;  %v1342_v22 = vld [vmem:[#allocation14 + $0xe0] sm:$0xff] }
 0x378   : > { %v1229_v23 = vpop.xlane.xlu0 %1228 }
 0x379   : > { %v1230_v24 = vsub.f32 %v1223_v19, %v1229_v23  ;;  %v1345_v19 = vld [vmem:[#allocation14 + $0xf8] sm:$0xff]  ;;  %v1344_v23 = vld [vmem:[#allocation14 + $0xf0] sm:$0xff] }
 0x37a   : > { %v1937_v21 = vpack.c.bf16 %v1345_v19, %v1343_v18 }
 0x37b   : > { %v1231_v25 = vmul.f32 1.442695, %v1230_v24  ;;  %v1347_v24 = vld [vmem:[#allocation14 + $0x108] sm:$0xff] }
 0x37c   : > { %v1074_v26 = vpop.xlane.xlu0 %1073 }
 0x37d   : > { %2075 = vpow2.f32 %v1231_v25  ;;  %v1075_v27 = vsub.f32 %v1067_v17, %v1074_v26  ;;  %v1340_v17 = vld [vmem:[#allocation14 + $0xd0] sm:$0xff]  ;;  %v1349_v25 = vld [vmem:[#allocation14 + $0x118] sm:$0xff]  ;;  %v1939_v26 = vpack.c.bf16 %v1344_v23, %v1342_v22 }
 0x37e   : > { %v1935_v20 = vpack.c.bf16 %v1340_v17, %v1338_v16 }
 0x37f   : > { %v1076_v28 = vmul.f32 1.442695, %v1075_v27  ;;  %v1941_v27 = vpack.c.bf16 %v1349_v25, %v1347_v24 }
 0x381   : > { %2077 = vpow2.f32 %v1076_v28  ;;  %v1346_v28 = vld [vmem:[#allocation14 + $0x100] sm:$0xff] }
 0x387   : > { %v2076_v29 = vpop.eup %2075 }
 0x388   : > { %v1233_v30 = vsel %vm1071_vm1, %v2076_v29, 0.0 }
 0x389   : > { %1234 = vadd.xlane.f32.xlu1 %v1233_v30  ;;  %v1351_v30 = vld [vmem:[#allocation14 + $0x128] sm:$0xff] }
 0x38b   : > { %v2078_v31 = vpop.eup %2077 }
 0x38c   : > { %v1078_v32 = vsel %vm1071_vm1, %v2078_v31, 0.0 }
 0x38d   : > { %1079 = vadd.xlane.f32.xlu1 %v1078_v32 }
 0x416   : > { %v1235_v36 = vpop.xlane.xlu1 %1234 }
 0x417   : > { %2079 = vrcp.f32 %v1235_v36  ;;  %v1355_v36 = vld [vmem:[#allocation14 + $0x148] sm:$0xff] }
 0x41a   : > { %v1080_v37 = vpop.xlane.xlu1 %1079 }
 0x41b   : > { %2081 = vrcp.f32 %v1080_v37  ;;  %v1357_v37 = vld [vmem:[#allocation14 + $0x158] sm:$0xff] }
 0x421   : > { %v2080_v38 = vpop.eup %2079 }
 0x422   : > { %v1237_v39 = vmul.f32 %v2080_v38, %v2076_v29  ;;  %v1348_v29 = vld [vmem:[#allocation14 + $0x110] sm:$0xff]  ;;  %v1947_v38 = vpack.c.bf16 %v1352_v35, %v1350_v34 }
 0x423   : > { %v1943_v32 = vpack.c.bf16 %v1348_v29, %v1346_v28 }
 0x424   : > { %1703 = vmatmul.mubr.msk.f32.vlgmr.msra.gmra.mrb[8].mxu0 %vm1071_vm1, %v1237_v39  ;;  %v1949_v39 = vpack.c.bf16 %v1357_v37, %v1355_v36 }
 0x425   : > { %v2082_v44 = vpop.eup %2081 }
 0x426   : > { %v1082_v47 = vmul.f32 %v2082_v44, %v2078_v31  ;;  %v1353_v31 = vld [vmem:[#allocation14 + $0x138] sm:$0xff]  ;;  %v1951_v44 = vpack.c.bf16 %v1356_v41, %v1354_v40 }
 0x427   : > { %v1945_v33 = vpack.c.bf16 %v1353_v31, %v1351_v30 }
 0x428   : > { %1689 = vmatmul.mubr.msk.f32.vlgmr.msra.gmra.mrb[6].mxu1 %vm1071_vm1, %v1082_v47  ;;  %v1358_v47 = vld [vmem:[#allocation14 + $0x160] sm:$0xff] }
 0x429   : > { %1912 = vmatpush1.bf16.msra.mxu1 %v1911_v45  ;;  %v1953_v45 = vpack.c.bf16 %v1361_v43, %v1359_v42 }
 0x42a   : > { %1914 = vmatprep.subr.bf16.mxu1 %v1913_v49  ;;  %v1360_v49 = vld [vmem:[#allocation14 + $0x170] sm:$0xff] }
 0x42b   : > { %v1955_v52 = vpack.c.bf16 %v1360_v49, %v1358_v47 }
 0x42d   : > { %1916 = vmatpush1.bf16.msra.mxu1 %v1915_v54  ;;  %v1362_v54 = vld [vmem:[#allocation14 + $0x180] sm:$0xff] }
 0x42e   : > { %1918 = vmatprep.subr.bf16.mxu1 %v1917_v55  ;;  %v1364_v55 = vld [vmem:[#allocation14 + $0x190] sm:$0xff] }
 0x42f   : > { %v1959_v58 = vpack.c.bf16 %v1364_v55, %v1362_v54 }
 0x431   : > { %1920 = vmatpush1.bf16.msra.mxu1 %v1919_v60  ;;  %v1366_v60 = vld [vmem:[#allocation14 + $0x1a0] sm:$0xff] }
 0x432   : > { %1922 = vmatprep.subr.bf16.mxu1 %v1921_v61  ;;  %v1368_v61 = vld [vmem:[#allocation14 + $0x1b0] sm:$0xff] }
 0x433   : > { %v1963_v0 = vpack.c.bf16 %v1368_v61, %v1366_v60 }
 0x435   : > { %1924 = vmatpush1.bf16.msra.mxu1 %v1923_v2  ;;  %v1370_v2 = vld [vmem:[#allocation14 + $0x1c0] sm:$0xff] }
 0x436   : > { %1926 = vmatprep.subr.bf16.mxu1 %v1925_v3  ;;  %v1372_v3 = vld [vmem:[#allocation14 + $0x1d0] sm:$0xff] }
 0x437   : > { %v1967_v4 = vpack.c.bf16 %v1372_v3, %v1370_v2 }
 0x439   : > { %1928 = vmatpush1.bf16.msra.mxu1 %v1927_v8  ;;  %v1374_v8 = vld [vmem:[#allocation14 + $0x1e0] sm:$0xff] }
 0x43a   : > { %1930 = vmatprep.subr.bf16.mxu1 %v1929_v9  ;;  %v1376_v9 = vld [vmem:[#allocation14 + $0x1f0] sm:$0xff] }
 0x43b   : > { %v1971_v10 = vpack.c.bf16 %v1376_v9, %v1374_v8 }
 0x43d   : > { %1932 = vmatpush1.bf16.msra.mxu1 %v1931_v14 }
 0x43e   : > { %1934 = vmatprep.subr.bf16.mxu1 %v1933_v15  ;;  %v1378_v15 = vld [vmem:[%s2931_s24] sm:$0x3] }
 0x43f   : > { %v1383_v16 = vrot.slane %v1378_v15, %v2770_v46  ;;  %v1387_v17 = vrot.slane %v1378_v15, %v2775_v48 }
 0x441   : > { %1936 = vmatpush1.bf16.msra.mxu1 %v1935_v20 }
 0x442   : > { %1938 = vmatprep.subr.bf16.mxu1 %v1937_v21 }
 0x445   : > { %1940 = vmatpush1.bf16.msra.mxu1 %v1939_v26 }
 0x446   : > { %1942 = vmatprep.subr.bf16.mxu1 %v1941_v27 }
 0x449   : > { %1944 = vmatpush1.bf16.msra.mxu1 %v1943_v32 }
 0x44a   : > { %1946 = vmatprep.subr.bf16.mxu1 %v1945_v33 }
 0x44d   : > { %1948 = vmatpush1.bf16.msra.mxu1 %v1947_v38 }
 0x44e   : > { %1950 = vmatprep.subr.bf16.mxu1 %v1949_v39 }
 0x451   : > { %1952 = vmatpush1.bf16.msra.mxu1 %v1951_v44 }
 0x452   : > { %1954 = vmatprep.subr.bf16.mxu1 %v1953_v45 }
 0x455   : > { %1956 = vmatpush1.bf16.msra.mxu1 %v1955_v52 }
 0x456   : > { %1958 = vmatprep.subr.bf16.mxu1 %v1957_v53 }
 0x459   : > { %1960 = vmatpush1.bf16.msra.mxu1 %v1959_v58 }
 0x45a   : > { %1962 = vmatprep.subr.bf16.mxu1 %v1961_v59 }
 0x45d   : > { %1964 = vmatpush1.bf16.msra.mxu1 %v1963_v0 }
 0x45e   : > { %1966 = vmatprep.subr.bf16.mxu1 %v1965_v1 }
 0x461   : > { %1968 = vmatpush1.bf16.msra.mxu1 %v1967_v4 }
 0x462   : > { %1970 = vmatprep.subr.bf16.mxu1 %v1969_v7 }
 0x465   : > { %1972 = vmatpush1.bf16.msra.mxu1 %v1971_v10 }
 0x4f7   : > { %v1307_v11 = vpop.f32.mrb[8].mxu0 }
 0x4f8   : > { %v1704_v12 = vpop.f32.mrb[9].mxu0  ;;  %1454 = vmatprep.mubr.f32.mxu1 %v1307_v11 }
 0x4fb   : > { %v1152_v13 = vpop.f32.mrb[6].mxu1 }
 0x4fc   : > { %v1690_v14 = vpop.f32.mrb[7].mxu1  ;;  %1455 = vmatmul.mubr.f32.vlgmr.msra.gmra.mrb[8].mxu1 %v1152_v13 }
 0x5cf   : > { %v1456_v18 = vpop.f32.mrb[8].mxu1 }
 0x5d0   : > { %v1457_v19 = vadd.f32 %v1456_v18, %v1383_v16  ;;  %v1458_v20 = vpop.f32.mrb[9].mxu1 }
 0x5d1   : > { %v1459_v21 = vadd.f32 %v1458_v20, %v1387_v17 }
 0x5d2   : > { %1461 = vst [vmem:[%s537_s6] sm:$0xff] %v1457_v19 }
 0x5d3   : > { %1462 = vst [vmem:[%s537_s6 + $0x8] sm:$0xff] %v1459_v21 }
 0x5d4   : > { %2298 = shalt.err (!%p2295_p12)
}
 0x5d5   : > { %s2299_s11 = scalar_lea.hbm %s2808_s26, 256  ;;  %s2303_s22 = scalar_lea.hbm %s2933_s25, 512 }
 0x5d6   : > { %p2300_p8 = scmp.ne.s32.totalorder %s2808_s26, %s2299_s11  ;;  %p2304_p1 = scmp.lt.u32.totalorder %s2808_s26, %s2933_s25 }
 0x5d7   : > { %p2305_p6 = scmp.lt.u32.totalorder %s2303_s22, %s2299_s11  ;;  %p2307_p5 = scmp.lt.u32.totalorder %s2299_s11, %s2808_s26 }
 0x5d8   : > { %p2301_p10 = pnand %p2300_p8, %p2934_p2 }
 0x5d9   : > { %p2306_p3 = por %p2305_p6, %p2304_p1 }
 0x5da   : > { %p2302_p13 = pneg %p2301_p10 }
 0x5db   : > { %p2308_p0 = por %p2307_p5, %p2306_p3 }
 0x5dd   : > { %p2309_p4 = pnand %p2308_p0, %p2302_p13 }
 0x5df   : > { %2312 = shalt.err (!%p2309_p4)
}
 0x5e0   : > { %1995 = dma.vmem_to_hbm [thread:$0]  (%p2934_p2), %s2810_s29, 256, %s2808_s26, %s1464_s21  }
 0x5e1 PF: > { %s2935_s28 = sld [smem:[#allocation21_spill]]  ;;  %s2936_s3 = sld [smem:[#allocation23_spill]] }
 0x5e2   : > { %p2938_p7 = scmp.ge.s32.totalorder %s2363_s20, 2 }
 0x5e7   : > { %s1490_s16 = sand.u32 1, %s2935_s28   ;;  %p2937_p11 = scmp.ne.s32.totalorder %s2936_s3, 0 }
 0x5e8   : > { %s1491_s1 = scalar_lea.sflag [#allocation5], %s1490_s16 }
 0x5e9   : > { %p2021_p9 = pnand %p2938_p7, %p2937_p11 }
 0x5eb   : > { %2346 = dma.done.wait (!%p2021_p9), %s1491_s1, 256  }
 0x5ec   : > { %2348 = vsyncadd (!%p2021_p9), %s1491_s1, 4294967040  ;;  %s2939_s20 = sld [smem:[#allocation24_spill]]  ;;  %s2940_s15 = sld [smem:[#allocation22_spill]] }
 0x5ed   : > { %s2941_s19 = sld [smem:[#allocation26_spill]]  ;;  %s2942_s17 = smov %s2355_s18 }
 0x5f2   : > { %p29_p12 = scmp.ge.s32.totalorder %s2939_s20, 4   ;;  %s2943_s18 = smov %s2940_s15 }
 0x5f4   :  { %31 = sbr.rel (!%p29_p12) target bundleno = 18 (0x12), region = 149 }
 0x5fb   :  { %1496 = vsyncpa [#allocation4], 1 }
 0x5fc   :  { %1498 = vsyncpa [#allocation4 + $0x1], 1 }
 0x5fd   :  { %1499 = vsyncpa [#allocation7], 1 }
 0x5fe   :  { %1501 = vsyncpa [#allocation7 + $0x1], 1 }
 0x5ff   :  { %1502 = vsyncpa [#allocation10], 1 }
 0x600   :  { %1503 = vsyncpa [#allocation13], 1 }
 0x601   :  { %1504 = vsyncpa [#allocation5], 1 }
 0x602   :  { %1506 = vsyncpa [#allocation5 + $0x1], 1 }

</bundles_post_ra>
